<compile_context>
chip_gen: v7x
topology: tpu7x:2x2x1
jax: 0.10.0
libtpu: 0.0.40
codegen_flags: <defaults>
</compile_context>

<pallas_src>
import math

import jax
import jax.numpy as jnp
from jax.experimental import pallas as pl
from jax.experimental.pallas import tpu as pltpu

# ---------------- config (small synthetic BERT) ----------------
B = 2          # batch
S = 8          # sequence length
H = 32         # hidden size
NH = 4         # attention heads
DH = H // NH   # head dim
FF = 64        # intermediate (FFN) size
LAYERS = 2     # encoder layers
VOCAB = 100
N_SENT = 2     # num_sentiment_classes
N_ASP = 5      # num_aspect_classes
NOUT = N_SENT + N_ASP
NOUT_PAD = 128             # lane-dense classifier output width (sliced to 7 outside)
BS = B * S                 # batch folded into sublanes: 16 rows
PCOLS = LAYERS * NH * BS   # 2*4*16 = 128 -> lane-dense attention-prob output


# ---------------- in-kernel helpers ----------------
def _ln(x, g, b):
    mu = jnp.mean(x, axis=-1, keepdims=True)
    var = jnp.mean((x - mu) ** 2, axis=-1, keepdims=True)
    return (x - mu) * jax.lax.rsqrt(var + 1e-12) * g + b


def _gelu(x):
    c = jnp.float32(math.sqrt(2.0 / math.pi))
    return 0.5 * x * (1.0 + jnp.tanh(c * (x + 0.044715 * x * x * x)))


# ---------------- the single fused kernel ----------------
def _fused_kernel(x_ref, bias_ref, embg_ref, embb_ref,
                  wqkv_ref, bqkv_ref, wo_ref, bo_ref,
                  ln1g_ref, ln1b_ref, wi_ref, bi_ref,
                  wo2_ref, bo2_ref, ln2g_ref, ln2b_ref,
                  pw_ref, pb_ref, fw_ref, fb_ref, hw_ref, hb_ref,
                  logits_ref, probs_ref):
    scale = jnp.float32(1.0 / math.sqrt(DH))
    bias = bias_ref[...]                                    # (BS, BS) additive mask

    # Embedding LayerNorm (embedding sum computed in wrapper glue).
    x = _ln(x_ref[...], embg_ref[...], embb_ref[...])       # (BS, H)

    prob_blocks = []
    for l in range(LAYERS):                                  # static unrolled layers
        # ---- self-attention: fused QKV matmul over the whole folded batch ----
        qkv = (jnp.dot(x, wqkv_ref[l], preferred_element_type=jnp.float32)
               + bqkv_ref[l])                                # (BS, 3H)
        ctx_blocks = []
        for h in range(NH):                                  # static unrolled heads
            qh = qkv[:, h * DH:(h + 1) * DH]                 # (BS, DH)
            kh = qkv[:, H + h * DH:H + (h + 1) * DH]
            vh = qkv[:, 2 * H + h * DH:2 * H + (h + 1) * DH]
            s = jax.lax.dot_general(                         # qh @ kh^T -> (BS, BS)
                qh, kh, (((1,), (1,)), ((), ())),
                preferred_element_type=jnp.float32) * scale + bias
            s = s - jnp.max(s, axis=-1, keepdims=True)
            e = jnp.exp(s)
            p = e / jnp.sum(e, axis=-1, keepdims=True)       # exact (probs returned)
            prob_blocks.append(p)
            ctx_blocks.append(
                jnp.dot(p, vh, preferred_element_type=jnp.float32))  # (BS, DH)
        ctx = jnp.concatenate(ctx_blocks, axis=1)            # (BS, H)
        attn_out = (jnp.dot(ctx, wo_ref[l], preferred_element_type=jnp.float32)
                    + bo_ref[l])
        x = _ln(attn_out + x, ln1g_ref[l], ln1b_ref[l])

        # ---- FFN: dense -> GELU -> dense, residual, LN2 ----
        inter = _gelu(jnp.dot(x, wi_ref[l], preferred_element_type=jnp.float32)
                      + bi_ref[l])
        ffn = (jnp.dot(inter, wo2_ref[l], preferred_element_type=jnp.float32)
               + bo2_ref[l])
        x = _ln(ffn + x, ln2g_ref[l], ln2b_ref[l])

    # Lane-dense (16, 128) attention-prob slab, one unmasked store.
    probs_ref[...] = jnp.concatenate(prob_blocks, axis=1)

    # ---- pooler + feature extractor + fused (padded) classifier heads ----
    # dropout(eval) = identity
    cls = jnp.concatenate([x[b * S:b * S + 1, :] for b in range(B)], axis=0)  # (B, H)
    pooled = jnp.tanh(
        jnp.dot(cls, pw_ref[...], preferred_element_type=jnp.float32) + pb_ref[...])
    feat = jnp.tanh(
        jnp.dot(pooled, fw_ref[...], preferred_element_type=jnp.float32) + fb_ref[...])
    logits_ref[...] = (
        jnp.dot(feat, hw_ref[...], preferred_element_type=jnp.float32) + hb_ref[...])


def run_fused(x_emb2d, bias, p):
    c2 = lambda i: (0, 0)
    c3 = lambda i: (0, 0, 0)
    s2 = lambda shp: pl.BlockSpec(shp, c2)
    s3 = lambda shp: pl.BlockSpec(shp, c3)

    in_specs = [
        s2((BS, H)),                                   # embeddings (post-sum)
        s2((BS, BS)),                                  # additive attention bias
        s2((1, H)), s2((1, H)),                        # emb LN gamma/beta
        s3((LAYERS, H, 3 * H)), s3((LAYERS, 1, 3 * H)),  # wqkv, bqkv
        s3((LAYERS, H, H)), s3((LAYERS, 1, H)),          # wo, bo
        s3((LAYERS, 1, H)), s3((LAYERS, 1, H)),          # ln1 g/b
        s3((LAYERS, H, FF)), s3((LAYERS, 1, FF)),        # wi, bi
        s3((LAYERS, FF, H)), s3((LAYERS, 1, H)),         # wo2, bo2
        s3((LAYERS, 1, H)), s3((LAYERS, 1, H)),          # ln2 g/b
        s2((H, H)), s2((1, H)),                          # pooler
        s2((H, H)), s2((1, H)),                          # feature extractor
        s2((H, NOUT_PAD)), s2((1, NOUT_PAD)),            # fused classifier (padded)
    ]
    out_specs = (
        pl.BlockSpec((B, NOUT_PAD), c2),                 # logits (lane-dense)
        pl.BlockSpec((BS, PCOLS), c2),                   # attention probs (lane-dense)
    )
    return pl.pallas_call(
        _fused_kernel,
        out_shape=(
            jax.ShapeDtypeStruct((B, NOUT_PAD), jnp.float32),
            jax.ShapeDtypeStruct((BS, PCOLS), jnp.float32),
        ),
        grid=(1,),
        in_specs=in_specs,
        out_specs=out_specs,
        compiler_params=pltpu.CompilerParams(dimension_semantics=("arbitrary",)),
    )(x_emb2d, bias,
      p["emb_ln_g"], p["emb_ln_b"],
      p["wqkv"], p["bqkv"], p["wo"], p["bo"],
      p["ln1_g"], p["ln1_b"], p["wi"], p["bi"],
      p["wo2"], p["bo2"], p["ln2_g"], p["ln2_b"],
      p["pool_w"], p["pool_b"], p["feat_w"], p["feat_b"],
      p["head_w"], p["head_b"])


# ---------------- parameter init (deterministic, synthetic, pre-stacked) ----------------
def init_params(key):
    keys = iter(jax.random.split(key, 64))

    def w(shape):
        return jax.random.normal(next(keys), shape, jnp.float32) * 0.02

    zeros = lambda s: jnp.zeros(s, jnp.float32)
    ones = lambda s: jnp.ones(s, jnp.float32)

    stacks = {k: [] for k in
              ["wqkv", "bqkv", "wo", "bo", "ln1_g", "ln1_b",
               "wi", "bi", "wo2", "bo2", "ln2_g", "ln2_b"]}
    for _ in range(LAYERS):
        wq, wk, wv = w((H, H)), w((H, H)), w((H, H))
        stacks["wqkv"].append(jnp.concatenate([wq, wk, wv], axis=1))   # (H, 3H)
        stacks["bqkv"].append(zeros((1, 3 * H)))
        stacks["wo"].append(w((H, H)));   stacks["bo"].append(zeros((1, H)))
        stacks["ln1_g"].append(ones((1, H))); stacks["ln1_b"].append(zeros((1, H)))
        stacks["wi"].append(w((H, FF)));  stacks["bi"].append(zeros((1, FF)))
        stacks["wo2"].append(w((FF, H))); stacks["bo2"].append(zeros((1, H)))
        stacks["ln2_g"].append(ones((1, H))); stacks["ln2_b"].append(zeros((1, H)))
    params = {k: jnp.stack(v) for k, v in stacks.items()}

    head_w = jnp.concatenate([w((H, N_SENT)), w((H, N_ASP))], axis=1)   # (H, 7)
    head_w = jnp.pad(head_w, ((0, 0), (0, NOUT_PAD - NOUT)))            # (H, 128)

    params.update({
        "word_emb": w((VOCAB, H)),
        "pos_emb": w((S, H)),
        "type_emb": w((2, H)),
        "emb_ln_g": ones((1, H)),
        "emb_ln_b": zeros((1, H)),
        "pool_w": w((H, H)), "pool_b": zeros((1, H)),
        "feat_w": w((H, H)), "feat_b": zeros((1, H)),
        "head_w": head_w, "head_b": zeros((1, NOUT_PAD)),
    })
    return params


# ---------------- forward pass ----------------
def forward(params, input_ids, attention_mask):
    # Embedding gathers are glue (data-dependent lookup); everything else is in-kernel.
    we = params["word_emb"][input_ids]                    # (B, S, H)
    pe = params["pos_emb"]                                # (S, H)
    te = params["type_emb"][0]                            # (H,)   token_type_ids = 0
    x_emb = (we + pe[None, :, :] + te[None, None, :]).reshape(BS, H)

    # Additive bias over the folded batch: BERT key-pad mask on the diagonal
    # batch blocks, -1e9 on cross-batch blocks (prevents cross-batch attention).
    pad_bias = (1.0 - attention_mask.astype(jnp.float32)) * -10000.0   # (B, S)
    same = jnp.eye(B, dtype=bool)
    bias = jnp.where(same[:, None, :, None], pad_bias[None, None, :, :],
                     jnp.float32(-1e9))                   # (B, 1, B, S)
    bias = jnp.broadcast_to(bias, (B, S, B, S)).reshape(BS, BS)

    logits_pad, probs2d = run_fused(x_emb, bias, params)  # (B,128), (16,128)

    # probs2d[bq*S+i, ((l*NH+h)*B + bk)*S + j] -> take the batch diagonal.
    r = probs2d.reshape(B, S, LAYERS, NH, B, S)
    r = r[jnp.arange(B), :, :, :, jnp.arange(B), :]       # (B, S, LAYERS, NH, S)
    attn = r.transpose(2, 0, 3, 1, 4)                     # (LAYERS, B, NH, S, S)

    return {
        "sentiment_logits": logits_pad[:, :N_SENT],            # (B, 2)
        "aspect_logits": logits_pad[:, N_SENT:NOUT],            # (B, 5)
        "attentions": tuple(attn[l] for l in range(LAYERS)),    # LAYERS x (B,NH,S,S)
    }


if __name__ == "__main__":
    key = jax.random.PRNGKey(0)
    pkey, ikey = jax.random.split(key)
    params = init_params(pkey)

    input_ids = jax.random.randint(ikey, (B, S), 0, VOCAB, dtype=jnp.int32)
    attention_mask = jnp.array(
        [[1, 1, 1, 1, 1, 1, 1, 1],
         [1, 1, 1, 1, 1, 1, 0, 0]], dtype=jnp.int32)

    out = jax.jit(forward)(params, input_ids, attention_mask)
    out = jax.block_until_ready(out)

    assert out["sentiment_logits"].shape == (B, N_SENT)
    assert out["aspect_logits"].shape == (B, N_ASP)
    assert len(out["attentions"]) == LAYERS
    assert out["attentions"][0].shape == (B, NH, S, S)
    assert bool(jnp.all(jnp.isfinite(out["sentiment_logits"])))
    assert bool(jnp.all(jnp.isfinite(out["attentions"][0])))
    print("KERNEL_OK")
</pallas_src>

<mosaic_0001>
module attributes {stable_mosaic.version = 11 : i64} {
  func.func @_fused_kernel(%arg0: i32, %arg1: memref<16x32xf32, #tpu.memory_space<vmem>>, %arg2: memref<16x16xf32, #tpu.memory_space<vmem>>, %arg3: memref<1x32xf32, #tpu.memory_space<vmem>>, %arg4: memref<1x32xf32, #tpu.memory_space<vmem>>, %arg5: memref<2x32x96xf32, #tpu.memory_space<vmem>>, %arg6: memref<2x1x96xf32, #tpu.memory_space<vmem>>, %arg7: memref<2x32x32xf32, #tpu.memory_space<vmem>>, %arg8: memref<2x1x32xf32, #tpu.memory_space<vmem>>, %arg9: memref<2x1x32xf32, #tpu.memory_space<vmem>>, %arg10: memref<2x1x32xf32, #tpu.memory_space<vmem>>, %arg11: memref<2x32x64xf32, #tpu.memory_space<vmem>>, %arg12: memref<2x1x64xf32, #tpu.memory_space<vmem>>, %arg13: memref<2x64x32xf32, #tpu.memory_space<vmem>>, %arg14: memref<2x1x32xf32, #tpu.memory_space<vmem>>, %arg15: memref<2x1x32xf32, #tpu.memory_space<vmem>>, %arg16: memref<2x1x32xf32, #tpu.memory_space<vmem>>, %arg17: memref<32x32xf32, #tpu.memory_space<vmem>>, %arg18: memref<1x32xf32, #tpu.memory_space<vmem>>, %arg19: memref<32x32xf32, #tpu.memory_space<vmem>>, %arg20: memref<1x32xf32, #tpu.memory_space<vmem>>, %arg21: memref<32x128xf32, #tpu.memory_space<vmem>>, %arg22: memref<1x128xf32, #tpu.memory_space<vmem>>, %arg23: memref<2x128xf32, #tpu.memory_space<vmem>>, %arg24: memref<16x128xf32, #tpu.memory_space<vmem>>) attributes {dimension_semantics = [#tpu.dimension_semantics<arbitrary>], iteration_bounds = array<i64: 1>, scalar_prefetch = 0 : i64, scratch_operands = 0 : i64, tpu.core_type = #tpu.core_type<tc>, window_params = [{pipeline_mode = #tpu.pipeline_mode<synchronous>, transform_indices = @transform_0, window_bounds = array<i64: 16, 32>}, {pipeline_mode = #tpu.pipeline_mode<synchronous>, transform_indices = @transform_1, window_bounds = array<i64: 16, 16>}, {pipeline_mode = #tpu.pipeline_mode<synchronous>, transform_indices = @transform_2, window_bounds = array<i64: 1, 32>}, {pipeline_mode = #tpu.pipeline_mode<synchronous>, transform_indices = @transform_3, window_bounds = array<i64: 1, 32>}, {pipeline_mode = #tpu.pipeline_mode<synchronous>, transform_indices = @transform_4, window_bounds = array<i64: 2, 32, 96>}, {pipeline_mode = #tpu.pipeline_mode<synchronous>, transform_indices = @transform_5, window_bounds = array<i64: 2, 1, 96>}, {pipeline_mode = #tpu.pipeline_mode<synchronous>, transform_indices = @transform_6, window_bounds = array<i64: 2, 32, 32>}, {pipeline_mode = #tpu.pipeline_mode<synchronous>, transform_indices = @transform_7, window_bounds = array<i64: 2, 1, 32>}, {pipeline_mode = #tpu.pipeline_mode<synchronous>, transform_indices = @transform_8, window_bounds = array<i64: 2, 1, 32>}, {pipeline_mode = #tpu.pipeline_mode<synchronous>, transform_indices = @transform_9, window_bounds = array<i64: 2, 1, 32>}, {pipeline_mode = #tpu.pipeline_mode<synchronous>, transform_indices = @transform_10, window_bounds = array<i64: 2, 32, 64>}, {pipeline_mode = #tpu.pipeline_mode<synchronous>, transform_indices = @transform_11, window_bounds = array<i64: 2, 1, 64>}, {pipeline_mode = #tpu.pipeline_mode<synchronous>, transform_indices = @transform_12, window_bounds = array<i64: 2, 64, 32>}, {pipeline_mode = #tpu.pipeline_mode<synchronous>, transform_indices = @transform_13, window_bounds = array<i64: 2, 1, 32>}, {pipeline_mode = #tpu.pipeline_mode<synchronous>, transform_indices = @transform_14, window_bounds = array<i64: 2, 1, 32>}, {pipeline_mode = #tpu.pipeline_mode<synchronous>, transform_indices = @transform_15, window_bounds = array<i64: 2, 1, 32>}, {pipeline_mode = #tpu.pipeline_mode<synchronous>, transform_indices = @transform_16, window_bounds = array<i64: 32, 32>}, {pipeline_mode = #tpu.pipeline_mode<synchronous>, transform_indices = @transform_17, window_bounds = array<i64: 1, 32>}, {pipeline_mode = #tpu.pipeline_mode<synchronous>, transform_indices = @transform_18, window_bounds = array<i64: 32, 32>}, {pipeline_mode = #tpu.pipeline_mode<synchronous>, transform_indices = @transform_19, window_bounds = array<i64: 1, 32>}, {pipeline_mode = #tpu.pipeline_mode<synchronous>, transform_indices = @transform_20, window_bounds = array<i64: 32, 128>}, {pipeline_mode = #tpu.pipeline_mode<synchronous>, transform_indices = @transform_21, window_bounds = array<i64: 1, 128>}, {pipeline_mode = #tpu.pipeline_mode<synchronous>, transform_indices = @transform_22, window_bounds = array<i64: 2, 128>}, {pipeline_mode = #tpu.pipeline_mode<synchronous>, transform_indices = @transform_23, window_bounds = array<i64: 16, 128>}]} {
    %c0 = arith.constant 0 : index
    %c0_0 = arith.constant 0 : index
    %0 = vector.load %arg2[%c0, %c0_0] : memref<16x16xf32, #tpu.memory_space<vmem>>, vector<16x16xf32>
    %c0_1 = arith.constant 0 : index
    %c0_2 = arith.constant 0 : index
    %1 = vector.load %arg1[%c0_1, %c0_2] : memref<16x32xf32, #tpu.memory_space<vmem>>, vector<16x32xf32>
    %c0_3 = arith.constant 0 : index
    %c0_4 = arith.constant 0 : index
    %2 = vector.load %arg3[%c0_3, %c0_4] : memref<1x32xf32, #tpu.memory_space<vmem>>, vector<1x32xf32>
    %c0_5 = arith.constant 0 : index
    %c0_6 = arith.constant 0 : index
    %3 = vector.load %arg4[%c0_5, %c0_6] : memref<1x32xf32, #tpu.memory_space<vmem>>, vector<1x32xf32>
    %cst = arith.constant dense<0.000000e+00> : vector<16xf32>
    %4 = vector.multi_reduction <add>, %1, %cst [1] : vector<16x32xf32> to vector<16xf32>
    %5 = vector.shape_cast %4 : vector<16xf32> to vector<16x1xf32>
    %cst_7 = arith.constant 3.200000e+01 : f32
    %6 = vector.broadcast %cst_7 : f32 to vector<16x1xf32>
    %7 = arith.divf %5, %6 : vector<16x1xf32>
    %8 = vector.broadcast %7 : vector<16x1xf32> to vector<16x32xf32>
    %9 = arith.subf %1, %8 : vector<16x32xf32>
    %10 = arith.mulf %9, %9 : vector<16x32xf32>
    %cst_8 = arith.constant dense<0.000000e+00> : vector<16xf32>
    %11 = vector.multi_reduction <add>, %10, %cst_8 [1] : vector<16x32xf32> to vector<16xf32>
    %12 = vector.shape_cast %11 : vector<16xf32> to vector<16x1xf32>
    %cst_9 = arith.constant 3.200000e+01 : f32
    %13 = vector.broadcast %cst_9 : f32 to vector<16x1xf32>
    %14 = arith.divf %12, %13 : vector<16x1xf32>
    %15 = vector.broadcast %7 : vector<16x1xf32> to vector<16x32xf32>
    %16 = arith.subf %1, %15 : vector<16x32xf32>
    %cst_10 = arith.constant 9.99999996E-13 : f32
    %17 = vector.broadcast %cst_10 : f32 to vector<16x1xf32>
    %18 = arith.addf %14, %17 : vector<16x1xf32>
    %19 = math.rsqrt %18 : vector<16x1xf32>
    %20 = vector.broadcast %19 : vector<16x1xf32> to vector<16x32xf32>
    %21 = arith.mulf %16, %20 : vector<16x32xf32>
    %22 = vector.broadcast %2 : vector<1x32xf32> to vector<16x32xf32>
    %23 = arith.mulf %21, %22 : vector<16x32xf32>
    %24 = vector.broadcast %3 : vector<1x32xf32> to vector<16x32xf32>
    %25 = arith.addf %23, %24 : vector<16x32xf32>
    %c0_11 = arith.constant 0 : index
    %c0_12 = arith.constant 0 : index
    %c0_13 = arith.constant 0 : index
    %26 = vector.load %arg5[%c0_11, %c0_12, %c0_13] : memref<2x32x96xf32, #tpu.memory_space<vmem>>, vector<1x32x96xf32>
    %27 = vector.shape_cast %26 : vector<1x32x96xf32> to vector<32x96xf32>
    %cst_14 = arith.constant dense<0.000000e+00> : vector<16x96xf32>
    %28 = tpu.matmul %25, %27, %cst_14 {dimension_numbers = #tpu.dot_dimension_numbers<[1], [0], [0], [1], [0, 0, 1, 1], [], []>} : vector<16x32xf32>, vector<32x96xf32>, vector<16x96xf32> -> vector<16x96xf32>
    %c0_15 = arith.constant 0 : index
    %c0_16 = arith.constant 0 : index
    %c0_17 = arith.constant 0 : index
    %29 = vector.load %arg6[%c0_15, %c0_16, %c0_17] : memref<2x1x96xf32, #tpu.memory_space<vmem>>, vector<1x1x96xf32>
    %30 = vector.shape_cast %29 : vector<1x1x96xf32> to vector<1x96xf32>
    %31 = vector.broadcast %30 : vector<1x96xf32> to vector<16x96xf32>
    %32 = arith.addf %28, %31 : vector<16x96xf32>
    %33 = vector.extract_strided_slice %32 {offsets = [0, 0], sizes = [16, 8], strides = [1, 1]} : vector<16x96xf32> to vector<16x8xf32>
    %34 = vector.extract_strided_slice %32 {offsets = [0, 32], sizes = [16, 8], strides = [1, 1]} : vector<16x96xf32> to vector<16x8xf32>
    %35 = vector.extract_strided_slice %32 {offsets = [0, 64], sizes = [16, 8], strides = [1, 1]} : vector<16x96xf32> to vector<16x8xf32>
    %cst_18 = arith.constant dense<0.000000e+00> : vector<16x16xf32>
    %36 = tpu.matmul %33, %34, %cst_18 {dimension_numbers = #tpu.dot_dimension_numbers<[1], [1], [0], [0], [0, 0, 1, 0], [], []>} : vector<16x8xf32>, vector<16x8xf32>, vector<16x16xf32> -> vector<16x16xf32>
    %cst_19 = arith.constant 0.353553385 : f32
    %37 = vector.broadcast %cst_19 : f32 to vector<16x16xf32>
    %38 = arith.mulf %36, %37 : vector<16x16xf32>
    %39 = arith.addf %38, %0 : vector<16x16xf32>
    %cst_20 = arith.constant dense<0xFF800000> : vector<16xf32>
    %40 = vector.multi_reduction <maximumf>, %39, %cst_20 [1] : vector<16x16xf32> to vector<16xf32>
    %41 = vector.shape_cast %40 : vector<16xf32> to vector<16x1xf32>
    %42 = vector.broadcast %41 : vector<16x1xf32> to vector<16x16xf32>
    %43 = arith.subf %39, %42 : vector<16x16xf32>
    %44 = math.exp %43 : vector<16x16xf32>
    %cst_21 = arith.constant dense<0.000000e+00> : vector<16xf32>
    %45 = vector.multi_reduction <add>, %44, %cst_21 [1] : vector<16x16xf32> to vector<16xf32>
    %46 = vector.shape_cast %45 : vector<16xf32> to vector<16x1xf32>
    %47 = vector.broadcast %46 : vector<16x1xf32> to vector<16x16xf32>
    %48 = arith.divf %44, %47 : vector<16x16xf32>
    %cst_22 = arith.constant dense<0.000000e+00> : vector<16x8xf32>
    %49 = tpu.matmul %48, %35, %cst_22 {dimension_numbers = #tpu.dot_dimension_numbers<[1], [0], [0], [1], [0, 0, 1, 1], [], []>} : vector<16x16xf32>, vector<16x8xf32>, vector<16x8xf32> -> vector<16x8xf32>
    %50 = vector.extract_strided_slice %32 {offsets = [0, 8], sizes = [16, 8], strides = [1, 1]} : vector<16x96xf32> to vector<16x8xf32>
    %51 = vector.extract_strided_slice %32 {offsets = [0, 40], sizes = [16, 8], strides = [1, 1]} : vector<16x96xf32> to vector<16x8xf32>
    %52 = vector.extract_strided_slice %32 {offsets = [0, 72], sizes = [16, 8], strides = [1, 1]} : vector<16x96xf32> to vector<16x8xf32>
    %cst_23 = arith.constant dense<0.000000e+00> : vector<16x16xf32>
    %53 = tpu.matmul %50, %51, %cst_23 {dimension_numbers = #tpu.dot_dimension_numbers<[1], [1], [0], [0], [0, 0, 1, 0], [], []>} : vector<16x8xf32>, vector<16x8xf32>, vector<16x16xf32> -> vector<16x16xf32>
    %cst_24 = arith.constant 0.353553385 : f32
    %54 = vector.broadcast %cst_24 : f32 to vector<16x16xf32>
    %55 = arith.mulf %53, %54 : vector<16x16xf32>
    %56 = arith.addf %55, %0 : vector<16x16xf32>
    %cst_25 = arith.constant dense<0xFF800000> : vector<16xf32>
    %57 = vector.multi_reduction <maximumf>, %56, %cst_25 [1] : vector<16x16xf32> to vector<16xf32>
    %58 = vector.shape_cast %57 : vector<16xf32> to vector<16x1xf32>
    %59 = vector.broadcast %58 : vector<16x1xf32> to vector<16x16xf32>
    %60 = arith.subf %56, %59 : vector<16x16xf32>
    %61 = math.exp %60 : vector<16x16xf32>
    %cst_26 = arith.constant dense<0.000000e+00> : vector<16xf32>
    %62 = vector.multi_reduction <add>, %61, %cst_26 [1] : vector<16x16xf32> to vector<16xf32>
    %63 = vector.shape_cast %62 : vector<16xf32> to vector<16x1xf32>
    %64 = vector.broadcast %63 : vector<16x1xf32> to vector<16x16xf32>
    %65 = arith.divf %61, %64 : vector<16x16xf32>
    %cst_27 = arith.constant dense<0.000000e+00> : vector<16x8xf32>
    %66 = tpu.matmul %65, %52, %cst_27 {dimension_numbers = #tpu.dot_dimension_numbers<[1], [0], [0], [1], [0, 0, 1, 1], [], []>} : vector<16x16xf32>, vector<16x8xf32>, vector<16x8xf32> -> vector<16x8xf32>
    %67 = vector.extract_strided_slice %32 {offsets = [0, 16], sizes = [16, 8], strides = [1, 1]} : vector<16x96xf32> to vector<16x8xf32>
    %68 = vector.extract_strided_slice %32 {offsets = [0, 48], sizes = [16, 8], strides = [1, 1]} : vector<16x96xf32> to vector<16x8xf32>
    %69 = vector.extract_strided_slice %32 {offsets = [0, 80], sizes = [16, 8], strides = [1, 1]} : vector<16x96xf32> to vector<16x8xf32>
    %cst_28 = arith.constant dense<0.000000e+00> : vector<16x16xf32>
    %70 = tpu.matmul %67, %68, %cst_28 {dimension_numbers = #tpu.dot_dimension_numbers<[1], [1], [0], [0], [0, 0, 1, 0], [], []>} : vector<16x8xf32>, vector<16x8xf32>, vector<16x16xf32> -> vector<16x16xf32>
    %cst_29 = arith.constant 0.353553385 : f32
    %71 = vector.broadcast %cst_29 : f32 to vector<16x16xf32>
    %72 = arith.mulf %70, %71 : vector<16x16xf32>
    %73 = arith.addf %72, %0 : vector<16x16xf32>
    %cst_30 = arith.constant dense<0xFF800000> : vector<16xf32>
    %74 = vector.multi_reduction <maximumf>, %73, %cst_30 [1] : vector<16x16xf32> to vector<16xf32>
    %75 = vector.shape_cast %74 : vector<16xf32> to vector<16x1xf32>
    %76 = vector.broadcast %75 : vector<16x1xf32> to vector<16x16xf32>
    %77 = arith.subf %73, %76 : vector<16x16xf32>
    %78 = math.exp %77 : vector<16x16xf32>
    %cst_31 = arith.constant dense<0.000000e+00> : vector<16xf32>
    %79 = vector.multi_reduction <add>, %78, %cst_31 [1] : vector<16x16xf32> to vector<16xf32>
    %80 = vector.shape_cast %79 : vector<16xf32> to vector<16x1xf32>
    %81 = vector.broadcast %80 : vector<16x1xf32> to vector<16x16xf32>
    %82 = arith.divf %78, %81 : vector<16x16xf32>
    %cst_32 = arith.constant dense<0.000000e+00> : vector<16x8xf32>
    %83 = tpu.matmul %82, %69, %cst_32 {dimension_numbers = #tpu.dot_dimension_numbers<[1], [0], [0], [1], [0, 0, 1, 1], [], []>} : vector<16x16xf32>, vector<16x8xf32>, vector<16x8xf32> -> vector<16x8xf32>
    %84 = vector.extract_strided_slice %32 {offsets = [0, 24], sizes = [16, 8], strides = [1, 1]} : vector<16x96xf32> to vector<16x8xf32>
    %85 = vector.extract_strided_slice %32 {offsets = [0, 56], sizes = [16, 8], strides = [1, 1]} : vector<16x96xf32> to vector<16x8xf32>
    %86 = vector.extract_strided_slice %32 {offsets = [0, 88], sizes = [16, 8], strides = [1, 1]} : vector<16x96xf32> to vector<16x8xf32>
    %cst_33 = arith.constant dense<0.000000e+00> : vector<16x16xf32>
    %87 = tpu.matmul %84, %85, %cst_33 {dimension_numbers = #tpu.dot_dimension_numbers<[1], [1], [0], [0], [0, 0, 1, 0], [], []>} : vector<16x8xf32>, vector<16x8xf32>, vector<16x16xf32> -> vector<16x16xf32>
    %cst_34 = arith.constant 0.353553385 : f32
    %88 = vector.broadcast %cst_34 : f32 to vector<16x16xf32>
    %89 = arith.mulf %87, %88 : vector<16x16xf32>
    %90 = arith.addf %89, %0 : vector<16x16xf32>
    %cst_35 = arith.constant dense<0xFF800000> : vector<16xf32>
    %91 = vector.multi_reduction <maximumf>, %90, %cst_35 [1] : vector<16x16xf32> to vector<16xf32>
    %92 = vector.shape_cast %91 : vector<16xf32> to vector<16x1xf32>
    %93 = vector.broadcast %92 : vector<16x1xf32> to vector<16x16xf32>
    %94 = arith.subf %90, %93 : vector<16x16xf32>
    %95 = math.exp %94 : vector<16x16xf32>
    %cst_36 = arith.constant dense<0.000000e+00> : vector<16xf32>
    %96 = vector.multi_reduction <add>, %95, %cst_36 [1] : vector<16x16xf32> to vector<16xf32>
    %97 = vector.shape_cast %96 : vector<16xf32> to vector<16x1xf32>
    %98 = vector.broadcast %97 : vector<16x1xf32> to vector<16x16xf32>
    %99 = arith.divf %95, %98 : vector<16x16xf32>
    %cst_37 = arith.constant dense<0.000000e+00> : vector<16x8xf32>
    %100 = tpu.matmul %99, %86, %cst_37 {dimension_numbers = #tpu.dot_dimension_numbers<[1], [0], [0], [1], [0, 0, 1, 1], [], []>} : vector<16x16xf32>, vector<16x8xf32>, vector<16x8xf32> -> vector<16x8xf32>
    %101 = tpu.concatenate %49, %66, %83, %100 in 1 : vector<16x8xf32>, vector<16x8xf32>, vector<16x8xf32>, vector<16x8xf32> -> vector<16x32xf32>
    %c0_38 = arith.constant 0 : index
    %c0_39 = arith.constant 0 : index
    %c0_40 = arith.constant 0 : index
    %102 = vector.load %arg7[%c0_38, %c0_39, %c0_40] : memref<2x32x32xf32, #tpu.memory_space<vmem>>, vector<1x32x32xf32>
    %103 = vector.shape_cast %102 : vector<1x32x32xf32> to vector<32x32xf32>
    %cst_41 = arith.constant dense<0.000000e+00> : vector<16x32xf32>
    %104 = tpu.matmul %101, %103, %cst_41 {dimension_numbers = #tpu.dot_dimension_numbers<[1], [0], [0], [1], [0, 0, 1, 1], [], []>} : vector<16x32xf32>, vector<32x32xf32>, vector<16x32xf32> -> vector<16x32xf32>
    %c0_42 = arith.constant 0 : index
    %c0_43 = arith.constant 0 : index
    %c0_44 = arith.constant 0 : index
    %105 = vector.load %arg8[%c0_42, %c0_43, %c0_44] : memref<2x1x32xf32, #tpu.memory_space<vmem>>, vector<1x1x32xf32>
    %106 = vector.shape_cast %105 : vector<1x1x32xf32> to vector<1x32xf32>
    %107 = vector.broadcast %106 : vector<1x32xf32> to vector<16x32xf32>
    %108 = arith.addf %104, %107 : vector<16x32xf32>
    %109 = arith.addf %108, %25 : vector<16x32xf32>
    %c0_45 = arith.constant 0 : index
    %c0_46 = arith.constant 0 : index
    %c0_47 = arith.constant 0 : index
    %110 = vector.load %arg9[%c0_45, %c0_46, %c0_47] : memref<2x1x32xf32, #tpu.memory_space<vmem>>, vector<1x1x32xf32>
    %111 = vector.shape_cast %110 : vector<1x1x32xf32> to vector<1x32xf32>
    %c0_48 = arith.constant 0 : index
    %c0_49 = arith.constant 0 : index
    %c0_50 = arith.constant 0 : index
    %112 = vector.load %arg10[%c0_48, %c0_49, %c0_50] : memref<2x1x32xf32, #tpu.memory_space<vmem>>, vector<1x1x32xf32>
    %113 = vector.shape_cast %112 : vector<1x1x32xf32> to vector<1x32xf32>
    %cst_51 = arith.constant dense<0.000000e+00> : vector<16xf32>
    %114 = vector.multi_reduction <add>, %109, %cst_51 [1] : vector<16x32xf32> to vector<16xf32>
    %115 = vector.shape_cast %114 : vector<16xf32> to vector<16x1xf32>
    %cst_52 = arith.constant 3.200000e+01 : f32
    %116 = vector.broadcast %cst_52 : f32 to vector<16x1xf32>
    %117 = arith.divf %115, %116 : vector<16x1xf32>
    %118 = vector.broadcast %117 : vector<16x1xf32> to vector<16x32xf32>
    %119 = arith.subf %109, %118 : vector<16x32xf32>
    %120 = arith.mulf %119, %119 : vector<16x32xf32>
    %cst_53 = arith.constant dense<0.000000e+00> : vector<16xf32>
    %121 = vector.multi_reduction <add>, %120, %cst_53 [1] : vector<16x32xf32> to vector<16xf32>
    %122 = vector.shape_cast %121 : vector<16xf32> to vector<16x1xf32>
    %cst_54 = arith.constant 3.200000e+01 : f32
    %123 = vector.broadcast %cst_54 : f32 to vector<16x1xf32>
    %124 = arith.divf %122, %123 : vector<16x1xf32>
    %125 = vector.broadcast %117 : vector<16x1xf32> to vector<16x32xf32>
    %126 = arith.subf %109, %125 : vector<16x32xf32>
    %cst_55 = arith.constant 9.99999996E-13 : f32
    %127 = vector.broadcast %cst_55 : f32 to vector<16x1xf32>
    %128 = arith.addf %124, %127 : vector<16x1xf32>
    %129 = math.rsqrt %128 : vector<16x1xf32>
    %130 = vector.broadcast %129 : vector<16x1xf32> to vector<16x32xf32>
    %131 = arith.mulf %126, %130 : vector<16x32xf32>
    %132 = vector.broadcast %111 : vector<1x32xf32> to vector<16x32xf32>
    %133 = arith.mulf %131, %132 : vector<16x32xf32>
    %134 = vector.broadcast %113 : vector<1x32xf32> to vector<16x32xf32>
    %135 = arith.addf %133, %134 : vector<16x32xf32>
    %c0_56 = arith.constant 0 : index
    %c0_57 = arith.constant 0 : index
    %c0_58 = arith.constant 0 : index
    %136 = vector.load %arg11[%c0_56, %c0_57, %c0_58] : memref<2x32x64xf32, #tpu.memory_space<vmem>>, vector<1x32x64xf32>
    %137 = vector.shape_cast %136 : vector<1x32x64xf32> to vector<32x64xf32>
    %cst_59 = arith.constant dense<0.000000e+00> : vector<16x64xf32>
    %138 = tpu.matmul %135, %137, %cst_59 {dimension_numbers = #tpu.dot_dimension_numbers<[1], [0], [0], [1], [0, 0, 1, 1], [], []>} : vector<16x32xf32>, vector<32x64xf32>, vector<16x64xf32> -> vector<16x64xf32>
    %c0_60 = arith.constant 0 : index
    %c0_61 = arith.constant 0 : index
    %c0_62 = arith.constant 0 : index
    %139 = vector.load %arg12[%c0_60, %c0_61, %c0_62] : memref<2x1x64xf32, #tpu.memory_space<vmem>>, vector<1x1x64xf32>
    %140 = vector.shape_cast %139 : vector<1x1x64xf32> to vector<1x64xf32>
    %141 = vector.broadcast %140 : vector<1x64xf32> to vector<16x64xf32>
    %142 = arith.addf %138, %141 : vector<16x64xf32>
    %cst_63 = arith.constant 5.000000e-01 : f32
    %143 = vector.broadcast %cst_63 : f32 to vector<16x64xf32>
    %144 = arith.mulf %143, %142 : vector<16x64xf32>
    %cst_64 = arith.constant 4.471500e-02 : f32
    %145 = vector.broadcast %cst_64 : f32 to vector<16x64xf32>
    %146 = arith.mulf %145, %142 : vector<16x64xf32>
    %147 = arith.mulf %146, %142 : vector<16x64xf32>
    %148 = arith.mulf %147, %142 : vector<16x64xf32>
    %149 = arith.addf %142, %148 : vector<16x64xf32>
    %cst_65 = arith.constant 0.797884583 : f32
    %150 = vector.broadcast %cst_65 : f32 to vector<16x64xf32>
    %151 = arith.mulf %150, %149 : vector<16x64xf32>
    %152 = math.tanh %151 : vector<16x64xf32>
    %cst_66 = arith.constant 1.000000e+00 : f32
    %153 = vector.broadcast %cst_66 : f32 to vector<16x64xf32>
    %154 = arith.addf %153, %152 : vector<16x64xf32>
    %155 = arith.mulf %144, %154 : vector<16x64xf32>
    %c0_67 = arith.constant 0 : index
    %c0_68 = arith.constant 0 : index
    %c0_69 = arith.constant 0 : index
    %156 = vector.load %arg13[%c0_67, %c0_68, %c0_69] : memref<2x64x32xf32, #tpu.memory_space<vmem>>, vector<1x64x32xf32>
    %157 = vector.shape_cast %156 : vector<1x64x32xf32> to vector<64x32xf32>
    %cst_70 = arith.constant dense<0.000000e+00> : vector<16x32xf32>
    %158 = tpu.matmul %155, %157, %cst_70 {dimension_numbers = #tpu.dot_dimension_numbers<[1], [0], [0], [1], [0, 0, 1, 1], [], []>} : vector<16x64xf32>, vector<64x32xf32>, vector<16x32xf32> -> vector<16x32xf32>
    %c0_71 = arith.constant 0 : index
    %c0_72 = arith.constant 0 : index
    %c0_73 = arith.constant 0 : index
    %159 = vector.load %arg14[%c0_71, %c0_72, %c0_73] : memref<2x1x32xf32, #tpu.memory_space<vmem>>, vector<1x1x32xf32>
    %160 = vector.shape_cast %159 : vector<1x1x32xf32> to vector<1x32xf32>
    %161 = vector.broadcast %160 : vector<1x32xf32> to vector<16x32xf32>
    %162 = arith.addf %158, %161 : vector<16x32xf32>
    %163 = arith.addf %162, %135 : vector<16x32xf32>
    %c0_74 = arith.constant 0 : index
    %c0_75 = arith.constant 0 : index
    %c0_76 = arith.constant 0 : index
    %164 = vector.load %arg15[%c0_74, %c0_75, %c0_76] : memref<2x1x32xf32, #tpu.memory_space<vmem>>, vector<1x1x32xf32>
    %165 = vector.shape_cast %164 : vector<1x1x32xf32> to vector<1x32xf32>
    %c0_77 = arith.constant 0 : index
    %c0_78 = arith.constant 0 : index
    %c0_79 = arith.constant 0 : index
    %166 = vector.load %arg16[%c0_77, %c0_78, %c0_79] : memref<2x1x32xf32, #tpu.memory_space<vmem>>, vector<1x1x32xf32>
    %167 = vector.shape_cast %166 : vector<1x1x32xf32> to vector<1x32xf32>
    %cst_80 = arith.constant dense<0.000000e+00> : vector<16xf32>
    %168 = vector.multi_reduction <add>, %163, %cst_80 [1] : vector<16x32xf32> to vector<16xf32>
    %169 = vector.shape_cast %168 : vector<16xf32> to vector<16x1xf32>
    %cst_81 = arith.constant 3.200000e+01 : f32
    %170 = vector.broadcast %cst_81 : f32 to vector<16x1xf32>
    %171 = arith.divf %169, %170 : vector<16x1xf32>
    %172 = vector.broadcast %171 : vector<16x1xf32> to vector<16x32xf32>
    %173 = arith.subf %163, %172 : vector<16x32xf32>
    %174 = arith.mulf %173, %173 : vector<16x32xf32>
    %cst_82 = arith.constant dense<0.000000e+00> : vector<16xf32>
    %175 = vector.multi_reduction <add>, %174, %cst_82 [1] : vector<16x32xf32> to vector<16xf32>
    %176 = vector.shape_cast %175 : vector<16xf32> to vector<16x1xf32>
    %cst_83 = arith.constant 3.200000e+01 : f32
    %177 = vector.broadcast %cst_83 : f32 to vector<16x1xf32>
    %178 = arith.divf %176, %177 : vector<16x1xf32>
    %179 = vector.broadcast %171 : vector<16x1xf32> to vector<16x32xf32>
    %180 = arith.subf %163, %179 : vector<16x32xf32>
    %cst_84 = arith.constant 9.99999996E-13 : f32
    %181 = vector.broadcast %cst_84 : f32 to vector<16x1xf32>
    %182 = arith.addf %178, %181 : vector<16x1xf32>
    %183 = math.rsqrt %182 : vector<16x1xf32>
    %184 = vector.broadcast %183 : vector<16x1xf32> to vector<16x32xf32>
    %185 = arith.mulf %180, %184 : vector<16x32xf32>
    %186 = vector.broadcast %165 : vector<1x32xf32> to vector<16x32xf32>
    %187 = arith.mulf %185, %186 : vector<16x32xf32>
    %188 = vector.broadcast %167 : vector<1x32xf32> to vector<16x32xf32>
    %189 = arith.addf %187, %188 : vector<16x32xf32>
    %c1 = arith.constant 1 : index
    %c0_85 = arith.constant 0 : index
    %c0_86 = arith.constant 0 : index
    %190 = vector.load %arg5[%c1, %c0_85, %c0_86] : memref<2x32x96xf32, #tpu.memory_space<vmem>>, vector<1x32x96xf32>
    %191 = vector.shape_cast %190 : vector<1x32x96xf32> to vector<32x96xf32>
    %cst_87 = arith.constant dense<0.000000e+00> : vector<16x96xf32>
    %192 = tpu.matmul %189, %191, %cst_87 {dimension_numbers = #tpu.dot_dimension_numbers<[1], [0], [0], [1], [0, 0, 1, 1], [], []>} : vector<16x32xf32>, vector<32x96xf32>, vector<16x96xf32> -> vector<16x96xf32>
    %c1_88 = arith.constant 1 : index
    %c0_89 = arith.constant 0 : index
    %c0_90 = arith.constant 0 : index
    %193 = vector.load %arg6[%c1_88, %c0_89, %c0_90] : memref<2x1x96xf32, #tpu.memory_space<vmem>>, vector<1x1x96xf32>
    %194 = vector.shape_cast %193 : vector<1x1x96xf32> to vector<1x96xf32>
    %195 = vector.broadcast %194 : vector<1x96xf32> to vector<16x96xf32>
    %196 = arith.addf %192, %195 : vector<16x96xf32>
    %197 = vector.extract_strided_slice %196 {offsets = [0, 0], sizes = [16, 8], strides = [1, 1]} : vector<16x96xf32> to vector<16x8xf32>
    %198 = vector.extract_strided_slice %196 {offsets = [0, 32], sizes = [16, 8], strides = [1, 1]} : vector<16x96xf32> to vector<16x8xf32>
    %199 = vector.extract_strided_slice %196 {offsets = [0, 64], sizes = [16, 8], strides = [1, 1]} : vector<16x96xf32> to vector<16x8xf32>
    %cst_91 = arith.constant dense<0.000000e+00> : vector<16x16xf32>
    %200 = tpu.matmul %197, %198, %cst_91 {dimension_numbers = #tpu.dot_dimension_numbers<[1], [1], [0], [0], [0, 0, 1, 0], [], []>} : vector<16x8xf32>, vector<16x8xf32>, vector<16x16xf32> -> vector<16x16xf32>
    %cst_92 = arith.constant 0.353553385 : f32
    %201 = vector.broadcast %cst_92 : f32 to vector<16x16xf32>
    %202 = arith.mulf %200, %201 : vector<16x16xf32>
    %203 = arith.addf %202, %0 : vector<16x16xf32>
    %cst_93 = arith.constant dense<0xFF800000> : vector<16xf32>
    %204 = vector.multi_reduction <maximumf>, %203, %cst_93 [1] : vector<16x16xf32> to vector<16xf32>
    %205 = vector.shape_cast %204 : vector<16xf32> to vector<16x1xf32>
    %206 = vector.broadcast %205 : vector<16x1xf32> to vector<16x16xf32>
    %207 = arith.subf %203, %206 : vector<16x16xf32>
    %208 = math.exp %207 : vector<16x16xf32>
    %cst_94 = arith.constant dense<0.000000e+00> : vector<16xf32>
    %209 = vector.multi_reduction <add>, %208, %cst_94 [1] : vector<16x16xf32> to vector<16xf32>
    %210 = vector.shape_cast %209 : vector<16xf32> to vector<16x1xf32>
    %211 = vector.broadcast %210 : vector<16x1xf32> to vector<16x16xf32>
    %212 = arith.divf %208, %211 : vector<16x16xf32>
    %cst_95 = arith.constant dense<0.000000e+00> : vector<16x8xf32>
    %213 = tpu.matmul %212, %199, %cst_95 {dimension_numbers = #tpu.dot_dimension_numbers<[1], [0], [0], [1], [0, 0, 1, 1], [], []>} : vector<16x16xf32>, vector<16x8xf32>, vector<16x8xf32> -> vector<16x8xf32>
    %214 = vector.extract_strided_slice %196 {offsets = [0, 8], sizes = [16, 8], strides = [1, 1]} : vector<16x96xf32> to vector<16x8xf32>
    %215 = vector.extract_strided_slice %196 {offsets = [0, 40], sizes = [16, 8], strides = [1, 1]} : vector<16x96xf32> to vector<16x8xf32>
    %216 = vector.extract_strided_slice %196 {offsets = [0, 72], sizes = [16, 8], strides = [1, 1]} : vector<16x96xf32> to vector<16x8xf32>
    %cst_96 = arith.constant dense<0.000000e+00> : vector<16x16xf32>
    %217 = tpu.matmul %214, %215, %cst_96 {dimension_numbers = #tpu.dot_dimension_numbers<[1], [1], [0], [0], [0, 0, 1, 0], [], []>} : vector<16x8xf32>, vector<16x8xf32>, vector<16x16xf32> -> vector<16x16xf32>
    %cst_97 = arith.constant 0.353553385 : f32
    %218 = vector.broadcast %cst_97 : f32 to vector<16x16xf32>
    %219 = arith.mulf %217, %218 : vector<16x16xf32>
    %220 = arith.addf %219, %0 : vector<16x16xf32>
    %cst_98 = arith.constant dense<0xFF800000> : vector<16xf32>
    %221 = vector.multi_reduction <maximumf>, %220, %cst_98 [1] : vector<16x16xf32> to vector<16xf32>
    %222 = vector.shape_cast %221 : vector<16xf32> to vector<16x1xf32>
    %223 = vector.broadcast %222 : vector<16x1xf32> to vector<16x16xf32>
    %224 = arith.subf %220, %223 : vector<16x16xf32>
    %225 = math.exp %224 : vector<16x16xf32>
    %cst_99 = arith.constant dense<0.000000e+00> : vector<16xf32>
    %226 = vector.multi_reduction <add>, %225, %cst_99 [1] : vector<16x16xf32> to vector<16xf32>
    %227 = vector.shape_cast %226 : vector<16xf32> to vector<16x1xf32>
    %228 = vector.broadcast %227 : vector<16x1xf32> to vector<16x16xf32>
    %229 = arith.divf %225, %228 : vector<16x16xf32>
    %cst_100 = arith.constant dense<0.000000e+00> : vector<16x8xf32>
    %230 = tpu.matmul %229, %216, %cst_100 {dimension_numbers = #tpu.dot_dimension_numbers<[1], [0], [0], [1], [0, 0, 1, 1], [], []>} : vector<16x16xf32>, vector<16x8xf32>, vector<16x8xf32> -> vector<16x8xf32>
    %231 = vector.extract_strided_slice %196 {offsets = [0, 16], sizes = [16, 8], strides = [1, 1]} : vector<16x96xf32> to vector<16x8xf32>
    %232 = vector.extract_strided_slice %196 {offsets = [0, 48], sizes = [16, 8], strides = [1, 1]} : vector<16x96xf32> to vector<16x8xf32>
    %233 = vector.extract_strided_slice %196 {offsets = [0, 80], sizes = [16, 8], strides = [1, 1]} : vector<16x96xf32> to vector<16x8xf32>
    %cst_101 = arith.constant dense<0.000000e+00> : vector<16x16xf32>
    %234 = tpu.matmul %231, %232, %cst_101 {dimension_numbers = #tpu.dot_dimension_numbers<[1], [1], [0], [0], [0, 0, 1, 0], [], []>} : vector<16x8xf32>, vector<16x8xf32>, vector<16x16xf32> -> vector<16x16xf32>
    %cst_102 = arith.constant 0.353553385 : f32
    %235 = vector.broadcast %cst_102 : f32 to vector<16x16xf32>
    %236 = arith.mulf %234, %235 : vector<16x16xf32>
    %237 = arith.addf %236, %0 : vector<16x16xf32>
    %cst_103 = arith.constant dense<0xFF800000> : vector<16xf32>
    %238 = vector.multi_reduction <maximumf>, %237, %cst_103 [1] : vector<16x16xf32> to vector<16xf32>
    %239 = vector.shape_cast %238 : vector<16xf32> to vector<16x1xf32>
    %240 = vector.broadcast %239 : vector<16x1xf32> to vector<16x16xf32>
    %241 = arith.subf %237, %240 : vector<16x16xf32>
    %242 = math.exp %241 : vector<16x16xf32>
    %cst_104 = arith.constant dense<0.000000e+00> : vector<16xf32>
    %243 = vector.multi_reduction <add>, %242, %cst_104 [1] : vector<16x16xf32> to vector<16xf32>
    %244 = vector.shape_cast %243 : vector<16xf32> to vector<16x1xf32>
    %245 = vector.broadcast %244 : vector<16x1xf32> to vector<16x16xf32>
    %246 = arith.divf %242, %245 : vector<16x16xf32>
    %cst_105 = arith.constant dense<0.000000e+00> : vector<16x8xf32>
    %247 = tpu.matmul %246, %233, %cst_105 {dimension_numbers = #tpu.dot_dimension_numbers<[1], [0], [0], [1], [0, 0, 1, 1], [], []>} : vector<16x16xf32>, vector<16x8xf32>, vector<16x8xf32> -> vector<16x8xf32>
    %248 = vector.extract_strided_slice %196 {offsets = [0, 24], sizes = [16, 8], strides = [1, 1]} : vector<16x96xf32> to vector<16x8xf32>
    %249 = vector.extract_strided_slice %196 {offsets = [0, 56], sizes = [16, 8], strides = [1, 1]} : vector<16x96xf32> to vector<16x8xf32>
    %250 = vector.extract_strided_slice %196 {offsets = [0, 88], sizes = [16, 8], strides = [1, 1]} : vector<16x96xf32> to vector<16x8xf32>
    %cst_106 = arith.constant dense<0.000000e+00> : vector<16x16xf32>
    %251 = tpu.matmul %248, %249, %cst_106 {dimension_numbers = #tpu.dot_dimension_numbers<[1], [1], [0], [0], [0, 0, 1, 0], [], []>} : vector<16x8xf32>, vector<16x8xf32>, vector<16x16xf32> -> vector<16x16xf32>
    %cst_107 = arith.constant 0.353553385 : f32
    %252 = vector.broadcast %cst_107 : f32 to vector<16x16xf32>
    %253 = arith.mulf %251, %252 : vector<16x16xf32>
    %254 = arith.addf %253, %0 : vector<16x16xf32>
    %cst_108 = arith.constant dense<0xFF800000> : vector<16xf32>
    %255 = vector.multi_reduction <maximumf>, %254, %cst_108 [1] : vector<16x16xf32> to vector<16xf32>
    %256 = vector.shape_cast %255 : vector<16xf32> to vector<16x1xf32>
    %257 = vector.broadcast %256 : vector<16x1xf32> to vector<16x16xf32>
    %258 = arith.subf %254, %257 : vector<16x16xf32>
    %259 = math.exp %258 : vector<16x16xf32>
    %cst_109 = arith.constant dense<0.000000e+00> : vector<16xf32>
    %260 = vector.multi_reduction <add>, %259, %cst_109 [1] : vector<16x16xf32> to vector<16xf32>
    %261 = vector.shape_cast %260 : vector<16xf32> to vector<16x1xf32>
    %262 = vector.broadcast %261 : vector<16x1xf32> to vector<16x16xf32>
    %263 = arith.divf %259, %262 : vector<16x16xf32>
    %cst_110 = arith.constant dense<0.000000e+00> : vector<16x8xf32>
    %264 = tpu.matmul %263, %250, %cst_110 {dimension_numbers = #tpu.dot_dimension_numbers<[1], [0], [0], [1], [0, 0, 1, 1], [], []>} : vector<16x16xf32>, vector<16x8xf32>, vector<16x8xf32> -> vector<16x8xf32>
    %265 = tpu.concatenate %213, %230, %247, %264 in 1 : vector<16x8xf32>, vector<16x8xf32>, vector<16x8xf32>, vector<16x8xf32> -> vector<16x32xf32>
    %c1_111 = arith.constant 1 : index
    %c0_112 = arith.constant 0 : index
    %c0_113 = arith.constant 0 : index
    %266 = vector.load %arg7[%c1_111, %c0_112, %c0_113] : memref<2x32x32xf32, #tpu.memory_space<vmem>>, vector<1x32x32xf32>
    %267 = vector.shape_cast %266 : vector<1x32x32xf32> to vector<32x32xf32>
    %cst_114 = arith.constant dense<0.000000e+00> : vector<16x32xf32>
    %268 = tpu.matmul %265, %267, %cst_114 {dimension_numbers = #tpu.dot_dimension_numbers<[1], [0], [0], [1], [0, 0, 1, 1], [], []>} : vector<16x32xf32>, vector<32x32xf32>, vector<16x32xf32> -> vector<16x32xf32>
    %c1_115 = arith.constant 1 : index
    %c0_116 = arith.constant 0 : index
    %c0_117 = arith.constant 0 : index
    %269 = vector.load %arg8[%c1_115, %c0_116, %c0_117] : memref<2x1x32xf32, #tpu.memory_space<vmem>>, vector<1x1x32xf32>
    %270 = vector.shape_cast %269 : vector<1x1x32xf32> to vector<1x32xf32>
    %271 = vector.broadcast %270 : vector<1x32xf32> to vector<16x32xf32>
    %272 = arith.addf %268, %271 : vector<16x32xf32>
    %273 = arith.addf %272, %189 : vector<16x32xf32>
    %c1_118 = arith.constant 1 : index
    %c0_119 = arith.constant 0 : index
    %c0_120 = arith.constant 0 : index
    %274 = vector.load %arg9[%c1_118, %c0_119, %c0_120] : memref<2x1x32xf32, #tpu.memory_space<vmem>>, vector<1x1x32xf32>
    %275 = vector.shape_cast %274 : vector<1x1x32xf32> to vector<1x32xf32>
    %c1_121 = arith.constant 1 : index
    %c0_122 = arith.constant 0 : index
    %c0_123 = arith.constant 0 : index
    %276 = vector.load %arg10[%c1_121, %c0_122, %c0_123] : memref<2x1x32xf32, #tpu.memory_space<vmem>>, vector<1x1x32xf32>
    %277 = vector.shape_cast %276 : vector<1x1x32xf32> to vector<1x32xf32>
    %cst_124 = arith.constant dense<0.000000e+00> : vector<16xf32>
    %278 = vector.multi_reduction <add>, %273, %cst_124 [1] : vector<16x32xf32> to vector<16xf32>
    %279 = vector.shape_cast %278 : vector<16xf32> to vector<16x1xf32>
    %cst_125 = arith.constant 3.200000e+01 : f32
    %280 = vector.broadcast %cst_125 : f32 to vector<16x1xf32>
    %281 = arith.divf %279, %280 : vector<16x1xf32>
    %282 = vector.broadcast %281 : vector<16x1xf32> to vector<16x32xf32>
    %283 = arith.subf %273, %282 : vector<16x32xf32>
    %284 = arith.mulf %283, %283 : vector<16x32xf32>
    %cst_126 = arith.constant dense<0.000000e+00> : vector<16xf32>
    %285 = vector.multi_reduction <add>, %284, %cst_126 [1] : vector<16x32xf32> to vector<16xf32>
    %286 = vector.shape_cast %285 : vector<16xf32> to vector<16x1xf32>
    %cst_127 = arith.constant 3.200000e+01 : f32
    %287 = vector.broadcast %cst_127 : f32 to vector<16x1xf32>
    %288 = arith.divf %286, %287 : vector<16x1xf32>
    %289 = vector.broadcast %281 : vector<16x1xf32> to vector<16x32xf32>
    %290 = arith.subf %273, %289 : vector<16x32xf32>
    %cst_128 = arith.constant 9.99999996E-13 : f32
    %291 = vector.broadcast %cst_128 : f32 to vector<16x1xf32>
    %292 = arith.addf %288, %291 : vector<16x1xf32>
    %293 = math.rsqrt %292 : vector<16x1xf32>
    %294 = vector.broadcast %293 : vector<16x1xf32> to vector<16x32xf32>
    %295 = arith.mulf %290, %294 : vector<16x32xf32>
    %296 = vector.broadcast %275 : vector<1x32xf32> to vector<16x32xf32>
    %297 = arith.mulf %295, %296 : vector<16x32xf32>
    %298 = vector.broadcast %277 : vector<1x32xf32> to vector<16x32xf32>
    %299 = arith.addf %297, %298 : vector<16x32xf32>
    %c1_129 = arith.constant 1 : index
    %c0_130 = arith.constant 0 : index
    %c0_131 = arith.constant 0 : index
    %300 = vector.load %arg11[%c1_129, %c0_130, %c0_131] : memref<2x32x64xf32, #tpu.memory_space<vmem>>, vector<1x32x64xf32>
    %301 = vector.shape_cast %300 : vector<1x32x64xf32> to vector<32x64xf32>
    %cst_132 = arith.constant dense<0.000000e+00> : vector<16x64xf32>
    %302 = tpu.matmul %299, %301, %cst_132 {dimension_numbers = #tpu.dot_dimension_numbers<[1], [0], [0], [1], [0, 0, 1, 1], [], []>} : vector<16x32xf32>, vector<32x64xf32>, vector<16x64xf32> -> vector<16x64xf32>
    %c1_133 = arith.constant 1 : index
    %c0_134 = arith.constant 0 : index
    %c0_135 = arith.constant 0 : index
    %303 = vector.load %arg12[%c1_133, %c0_134, %c0_135] : memref<2x1x64xf32, #tpu.memory_space<vmem>>, vector<1x1x64xf32>
    %304 = vector.shape_cast %303 : vector<1x1x64xf32> to vector<1x64xf32>
    %305 = vector.broadcast %304 : vector<1x64xf32> to vector<16x64xf32>
    %306 = arith.addf %302, %305 : vector<16x64xf32>
    %cst_136 = arith.constant 5.000000e-01 : f32
    %307 = vector.broadcast %cst_136 : f32 to vector<16x64xf32>
    %308 = arith.mulf %307, %306 : vector<16x64xf32>
    %cst_137 = arith.constant 4.471500e-02 : f32
    %309 = vector.broadcast %cst_137 : f32 to vector<16x64xf32>
    %310 = arith.mulf %309, %306 : vector<16x64xf32>
    %311 = arith.mulf %310, %306 : vector<16x64xf32>
    %312 = arith.mulf %311, %306 : vector<16x64xf32>
    %313 = arith.addf %306, %312 : vector<16x64xf32>
    %cst_138 = arith.constant 0.797884583 : f32
    %314 = vector.broadcast %cst_138 : f32 to vector<16x64xf32>
    %315 = arith.mulf %314, %313 : vector<16x64xf32>
    %316 = math.tanh %315 : vector<16x64xf32>
    %cst_139 = arith.constant 1.000000e+00 : f32
    %317 = vector.broadcast %cst_139 : f32 to vector<16x64xf32>
    %318 = arith.addf %317, %316 : vector<16x64xf32>
    %319 = arith.mulf %308, %318 : vector<16x64xf32>
    %c1_140 = arith.constant 1 : index
    %c0_141 = arith.constant 0 : index
    %c0_142 = arith.constant 0 : index
    %320 = vector.load %arg13[%c1_140, %c0_141, %c0_142] : memref<2x64x32xf32, #tpu.memory_space<vmem>>, vector<1x64x32xf32>
    %321 = vector.shape_cast %320 : vector<1x64x32xf32> to vector<64x32xf32>
    %cst_143 = arith.constant dense<0.000000e+00> : vector<16x32xf32>
    %322 = tpu.matmul %319, %321, %cst_143 {dimension_numbers = #tpu.dot_dimension_numbers<[1], [0], [0], [1], [0, 0, 1, 1], [], []>} : vector<16x64xf32>, vector<64x32xf32>, vector<16x32xf32> -> vector<16x32xf32>
    %c1_144 = arith.constant 1 : index
    %c0_145 = arith.constant 0 : index
    %c0_146 = arith.constant 0 : index
    %323 = vector.load %arg14[%c1_144, %c0_145, %c0_146] : memref<2x1x32xf32, #tpu.memory_space<vmem>>, vector<1x1x32xf32>
    %324 = vector.shape_cast %323 : vector<1x1x32xf32> to vector<1x32xf32>
    %325 = vector.broadcast %324 : vector<1x32xf32> to vector<16x32xf32>
    %326 = arith.addf %322, %325 : vector<16x32xf32>
    %327 = arith.addf %326, %299 : vector<16x32xf32>
    %c1_147 = arith.constant 1 : index
    %c0_148 = arith.constant 0 : index
    %c0_149 = arith.constant 0 : index
    %328 = vector.load %arg15[%c1_147, %c0_148, %c0_149] : memref<2x1x32xf32, #tpu.memory_space<vmem>>, vector<1x1x32xf32>
    %329 = vector.shape_cast %328 : vector<1x1x32xf32> to vector<1x32xf32>
    %c1_150 = arith.constant 1 : index
    %c0_151 = arith.constant 0 : index
    %c0_152 = arith.constant 0 : index
    %330 = vector.load %arg16[%c1_150, %c0_151, %c0_152] : memref<2x1x32xf32, #tpu.memory_space<vmem>>, vector<1x1x32xf32>
    %331 = vector.shape_cast %330 : vector<1x1x32xf32> to vector<1x32xf32>
    %cst_153 = arith.constant dense<0.000000e+00> : vector<16xf32>
    %332 = vector.multi_reduction <add>, %327, %cst_153 [1] : vector<16x32xf32> to vector<16xf32>
    %333 = vector.shape_cast %332 : vector<16xf32> to vector<16x1xf32>
    %cst_154 = arith.constant 3.200000e+01 : f32
    %334 = vector.broadcast %cst_154 : f32 to vector<16x1xf32>
    %335 = arith.divf %333, %334 : vector<16x1xf32>
    %336 = vector.broadcast %335 : vector<16x1xf32> to vector<16x32xf32>
    %337 = arith.subf %327, %336 : vector<16x32xf32>
    %338 = arith.mulf %337, %337 : vector<16x32xf32>
    %cst_155 = arith.constant dense<0.000000e+00> : vector<16xf32>
    %339 = vector.multi_reduction <add>, %338, %cst_155 [1] : vector<16x32xf32> to vector<16xf32>
    %340 = vector.shape_cast %339 : vector<16xf32> to vector<16x1xf32>
    %cst_156 = arith.constant 3.200000e+01 : f32
    %341 = vector.broadcast %cst_156 : f32 to vector<16x1xf32>
    %342 = arith.divf %340, %341 : vector<16x1xf32>
    %343 = vector.broadcast %335 : vector<16x1xf32> to vector<16x32xf32>
    %344 = arith.subf %327, %343 : vector<16x32xf32>
    %cst_157 = arith.constant 9.99999996E-13 : f32
    %345 = vector.broadcast %cst_157 : f32 to vector<16x1xf32>
    %346 = arith.addf %342, %345 : vector<16x1xf32>
    %347 = math.rsqrt %346 : vector<16x1xf32>
    %348 = vector.broadcast %347 : vector<16x1xf32> to vector<16x32xf32>
    %349 = arith.mulf %344, %348 : vector<16x32xf32>
    %350 = vector.broadcast %329 : vector<1x32xf32> to vector<16x32xf32>
    %351 = arith.mulf %349, %350 : vector<16x32xf32>
    %352 = vector.broadcast %331 : vector<1x32xf32> to vector<16x32xf32>
    %353 = arith.addf %351, %352 : vector<16x32xf32>
    %354 = tpu.concatenate %48, %65, %82, %99, %212, %229, %246, %263 in 1 : vector<16x16xf32>, vector<16x16xf32>, vector<16x16xf32>, vector<16x16xf32>, vector<16x16xf32>, vector<16x16xf32>, vector<16x16xf32>, vector<16x16xf32> -> vector<16x128xf32>
    %c0_158 = arith.constant 0 : index
    %c0_159 = arith.constant 0 : index
    %355 = vector.load %arg24[%c0_158, %c0_159] : memref<16x128xf32, #tpu.memory_space<vmem>>, vector<16x128xf32>
    tpu.vector_store %arg24[%c0_158, %c0_159], %354 {strides = array<i32>} : memref<16x128xf32, #tpu.memory_space<vmem>>, vector<16x128xf32>,
    %356 = vector.extract_strided_slice %353 {offsets = [0, 0], sizes = [1, 32], strides = [1, 1]} : vector<16x32xf32> to vector<1x32xf32>
    %357 = vector.extract_strided_slice %353 {offsets = [8, 0], sizes = [1, 32], strides = [1, 1]} : vector<16x32xf32> to vector<1x32xf32>
    %358 = tpu.concatenate %356, %357 in 0 : vector<1x32xf32>, vector<1x32xf32> -> vector<2x32xf32>
    %c0_160 = arith.constant 0 : index
    %c0_161 = arith.constant 0 : index
    %359 = vector.load %arg17[%c0_160, %c0_161] : memref<32x32xf32, #tpu.memory_space<vmem>>, vector<32x32xf32>
    %cst_162 = arith.constant dense<0.000000e+00> : vector<2x32xf32>
    %360 = tpu.matmul %358, %359, %cst_162 {dimension_numbers = #tpu.dot_dimension_numbers<[1], [0], [0], [1], [0, 0, 1, 1], [], []>} : vector<2x32xf32>, vector<32x32xf32>, vector<2x32xf32> -> vector<2x32xf32>
    %c0_163 = arith.constant 0 : index
    %c0_164 = arith.constant 0 : index
    %361 = vector.load %arg18[%c0_163, %c0_164] : memref<1x32xf32, #tpu.memory_space<vmem>>, vector<1x32xf32>
    %362 = vector.broadcast %361 : vector<1x32xf32> to vector<2x32xf32>
    %363 = arith.addf %360, %362 : vector<2x32xf32>
    %364 = math.tanh %363 : vector<2x32xf32>
    %c0_165 = arith.constant 0 : index
    %c0_166 = arith.constant 0 : index
    %365 = vector.load %arg19[%c0_165, %c0_166] : memref<32x32xf32, #tpu.memory_space<vmem>>, vector<32x32xf32>
    %cst_167 = arith.constant dense<0.000000e+00> : vector<2x32xf32>
    %366 = tpu.matmul %364, %365, %cst_167 {dimension_numbers = #tpu.dot_dimension_numbers<[1], [0], [0], [1], [0, 0, 1, 1], [], []>} : vector<2x32xf32>, vector<32x32xf32>, vector<2x32xf32> -> vector<2x32xf32>
    %c0_168 = arith.constant 0 : index
    %c0_169 = arith.constant 0 : index
    %367 = vector.load %arg20[%c0_168, %c0_169] : memref<1x32xf32, #tpu.memory_space<vmem>>, vector<1x32xf32>
    %368 = vector.broadcast %367 : vector<1x32xf32> to vector<2x32xf32>
    %369 = arith.addf %366, %368 : vector<2x32xf32>
    %370 = math.tanh %369 : vector<2x32xf32>
    %c0_170 = arith.constant 0 : index
    %c0_171 = arith.constant 0 : index
    %371 = vector.load %arg21[%c0_170, %c0_171] : memref<32x128xf32, #tpu.memory_space<vmem>>, vector<32x128xf32>
    %cst_172 = arith.constant dense<0.000000e+00> : vector<2x128xf32>
    %372 = tpu.matmul %370, %371, %cst_172 {dimension_numbers = #tpu.dot_dimension_numbers<[1], [0], [0], [1], [0, 0, 1, 1], [], []>} : vector<2x32xf32>, vector<32x128xf32>, vector<2x128xf32> -> vector<2x128xf32>
    %c0_173 = arith.constant 0 : index
    %c0_174 = arith.constant 0 : index
    %373 = vector.load %arg22[%c0_173, %c0_174] : memref<1x128xf32, #tpu.memory_space<vmem>>, vector<1x128xf32>
    %374 = vector.broadcast %373 : vector<1x128xf32> to vector<2x128xf32>
    %375 = arith.addf %372, %374 : vector<2x128xf32>
    %c0_175 = arith.constant 0 : index
    %c0_176 = arith.constant 0 : index
    %376 = vector.load %arg23[%c0_175, %c0_176] : memref<2x128xf32, #tpu.memory_space<vmem>>, vector<2x128xf32>
    tpu.vector_store %arg23[%c0_175, %c0_176], %375 {strides = array<i32>} : memref<2x128xf32, #tpu.memory_space<vmem>>, vector<2x128xf32>,
    return
  }
  func.func @transform_0(%arg0: i32) -> (i32, i32) {
    %c0_i32 = arith.constant 0 : i32
    %c0_i32_0 = arith.constant 0 : i32
    %c0_i32_1 = arith.constant 0 : i32
    return %c0_i32, %c0_i32_0 : i32, i32
  }
  func.func @transform_1(%arg0: i32) -> (i32, i32) {
    %c0_i32 = arith.constant 0 : i32
    %c0_i32_0 = arith.constant 0 : i32
    %c0_i32_1 = arith.constant 0 : i32
    return %c0_i32, %c0_i32_0 : i32, i32
  }
  func.func @transform_2(%arg0: i32) -> (i32, i32) {
    %c0_i32 = arith.constant 0 : i32
    %c0_i32_0 = arith.constant 0 : i32
    %c0_i32_1 = arith.constant 0 : i32
    return %c0_i32, %c0_i32_0 : i32, i32
  }
  func.func @transform_3(%arg0: i32) -> (i32, i32) {
    %c0_i32 = arith.constant 0 : i32
    %c0_i32_0 = arith.constant 0 : i32
    %c0_i32_1 = arith.constant 0 : i32
    return %c0_i32, %c0_i32_0 : i32, i32
  }
  func.func @transform_4(%arg0: i32) -> (i32, i32, i32) {
    %c0_i32 = arith.constant 0 : i32
    %c0_i32_0 = arith.constant 0 : i32
    %c0_i32_1 = arith.constant 0 : i32
    %c0_i32_2 = arith.constant 0 : i32
    return %c0_i32, %c0_i32_0, %c0_i32_1 : i32, i32, i32
  }
  func.func @transform_5(%arg0: i32) -> (i32, i32, i32) {
    %c0_i32 = arith.constant 0 : i32
    %c0_i32_0 = arith.constant 0 : i32
    %c0_i32_1 = arith.constant 0 : i32
    %c0_i32_2 = arith.constant 0 : i32
    return %c0_i32, %c0_i32_0, %c0_i32_1 : i32, i32, i32
  }
  func.func @transform_6(%arg0: i32) -> (i32, i32, i32) {
    %c0_i32 = arith.constant 0 : i32
    %c0_i32_0 = arith.constant 0 : i32
    %c0_i32_1 = arith.constant 0 : i32
    %c0_i32_2 = arith.constant 0 : i32
    return %c0_i32, %c0_i32_0, %c0_i32_1 : i32, i32, i32
  }
  func.func @transform_7(%arg0: i32) -> (i32, i32, i32) {
    %c0_i32 = arith.constant 0 : i32
    %c0_i32_0 = arith.constant 0 : i32
    %c0_i32_1 = arith.constant 0 : i32
    %c0_i32_2 = arith.constant 0 : i32
    return %c0_i32, %c0_i32_0, %c0_i32_1 : i32, i32, i32
  }
  func.func @transform_8(%arg0: i32) -> (i32, i32, i32) {
    %c0_i32 = arith.constant 0 : i32
    %c0_i32_0 = arith.constant 0 : i32
    %c0_i32_1 = arith.constant 0 : i32
    %c0_i32_2 = arith.constant 0 : i32
    return %c0_i32, %c0_i32_0, %c0_i32_1 : i32, i32, i32
  }
  func.func @transform_9(%arg0: i32) -> (i32, i32, i32) {
    %c0_i32 = arith.constant 0 : i32
    %c0_i32_0 = arith.constant 0 : i32
    %c0_i32_1 = arith.constant 0 : i32
    %c0_i32_2 = arith.constant 0 : i32
    return %c0_i32, %c0_i32_0, %c0_i32_1 : i32, i32, i32
  }
  func.func @transform_10(%arg0: i32) -> (i32, i32, i32) {
    %c0_i32 = arith.constant 0 : i32
    %c0_i32_0 = arith.constant 0 : i32
    %c0_i32_1 = arith.constant 0 : i32
    %c0_i32_2 = arith.constant 0 : i32
    return %c0_i32, %c0_i32_0, %c0_i32_1 : i32, i32, i32
  }
  func.func @transform_11(%arg0: i32) -> (i32, i32, i32) {
    %c0_i32 = arith.constant 0 : i32
    %c0_i32_0 = arith.constant 0 : i32
    %c0_i32_1 = arith.constant 0 : i32
    %c0_i32_2 = arith.constant 0 : i32
    return %c0_i32, %c0_i32_0, %c0_i32_1 : i32, i32, i32
  }
  func.func @transform_12(%arg0: i32) -> (i32, i32, i32) {
    %c0_i32 = arith.constant 0 : i32
    %c0_i32_0 = arith.constant 0 : i32
    %c0_i32_1 = arith.constant 0 : i32
    %c0_i32_2 = arith.constant 0 : i32
    return %c0_i32, %c0_i32_0, %c0_i32_1 : i32, i32, i32
  }
  func.func @transform_13(%arg0: i32) -> (i32, i32, i32) {
    %c0_i32 = arith.constant 0 : i32
    %c0_i32_0 = arith.constant 0 : i32
    %c0_i32_1 = arith.constant 0 : i32
    %c0_i32_2 = arith.constant 0 : i32
    return %c0_i32, %c0_i32_0, %c0_i32_1 : i32, i32, i32
  }
  func.func @transform_14(%arg0: i32) -> (i32, i32, i32) {
    %c0_i32 = arith.constant 0 : i32
    %c0_i32_0 = arith.constant 0 : i32
    %c0_i32_1 = arith.constant 0 : i32
    %c0_i32_2 = arith.constant 0 : i32
    return %c0_i32, %c0_i32_0, %c0_i32_1 : i32, i32, i32
  }
  func.func @transform_15(%arg0: i32) -> (i32, i32, i32) {
    %c0_i32 = arith.constant 0 : i32
    %c0_i32_0 = arith.constant 0 : i32
    %c0_i32_1 = arith.constant 0 : i32
    %c0_i32_2 = arith.constant 0 : i32
    return %c0_i32, %c0_i32_0, %c0_i32_1 : i32, i32, i32
  }
  func.func @transform_16(%arg0: i32) -> (i32, i32) {
    %c0_i32 = arith.constant 0 : i32
    %c0_i32_0 = arith.constant 0 : i32
    %c0_i32_1 = arith.constant 0 : i32
    return %c0_i32, %c0_i32_0 : i32, i32
  }
  func.func @transform_17(%arg0: i32) -> (i32, i32) {
    %c0_i32 = arith.constant 0 : i32
    %c0_i32_0 = arith.constant 0 : i32
    %c0_i32_1 = arith.constant 0 : i32
    return %c0_i32, %c0_i32_0 : i32, i32
  }
  func.func @transform_18(%arg0: i32) -> (i32, i32) {
    %c0_i32 = arith.constant 0 : i32
    %c0_i32_0 = arith.constant 0 : i32
    %c0_i32_1 = arith.constant 0 : i32
    return %c0_i32, %c0_i32_0 : i32, i32
  }
  func.func @transform_19(%arg0: i32) -> (i32, i32) {
    %c0_i32 = arith.constant 0 : i32
    %c0_i32_0 = arith.constant 0 : i32
    %c0_i32_1 = arith.constant 0 : i32
    return %c0_i32, %c0_i32_0 : i32, i32
  }
  func.func @transform_20(%arg0: i32) -> (i32, i32) {
    %c0_i32 = arith.constant 0 : i32
    %c0_i32_0 = arith.constant 0 : i32
    %c0_i32_1 = arith.constant 0 : i32
    return %c0_i32, %c0_i32_0 : i32, i32
  }
  func.func @transform_21(%arg0: i32) -> (i32, i32) {
    %c0_i32 = arith.constant 0 : i32
    %c0_i32_0 = arith.constant 0 : i32
    %c0_i32_1 = arith.constant 0 : i32
    return %c0_i32, %c0_i32_0 : i32, i32
  }
  func.func @transform_22(%arg0: i32) -> (i32, i32) {
    %c0_i32 = arith.constant 0 : i32
    %c0_i32_0 = arith.constant 0 : i32
    %c0_i32_1 = arith.constant 0 : i32
    return %c0_i32, %c0_i32_0 : i32, i32
  }
  func.func @transform_23(%arg0: i32) -> (i32, i32) {
    %c0_i32 = arith.constant 0 : i32
    %c0_i32_0 = arith.constant 0 : i32
    %c0_i32_1 = arith.constant 0 : i32
    return %c0_i32, %c0_i32_0 : i32, i32
  }
}

</mosaic_0001>

<bundles_post_ra>
// kernel: forward.1
= control target key start
LH: loop header
LB: loop body
LE: loop exit
PB: predicated region body
PF: predicated region fallthrough
CT: control target
= control target key end

     0   :  { %vm79_vm0 = vcmask 261120   ;;  %vm221_vm1 = vcmask 64512   ;;  %s4831_s27 = smov 96   ;;  %s4829_s28 = smov 120   ;;  %vm309_vm3 = vcmask 130048   ;;  %vm1059_vm4 = vcmask 195584   ;;  %s4780_s0 = inlined_call_operand.vmem [shape: f32[16,32], index: 0, kind: input, shape index: {}]   ;;  %s4781_s4 = inlined_call_operand.vmem [shape: f32[2,32,96], index: 4, kind: input, shape index: {}]   ;;  %s4782_s2 = inlined_call_operand.vmem [shape: f32[1,32], index: 2, kind: input, shape index: {}]   ;;  %s4783_s3 = inlined_call_operand.vmem [shape: f32[1,32], index: 3, kind: input, shape index: {}]   ;;  %s4784_s5 = inlined_call_operand.vmem [shape: f32[2,1,96], index: 5, kind: input, shape index: {}]   ;;  %s4785_s1 = inlined_call_operand.vmem [shape: f32[16,16], index: 1, kind: input, shape index: {}]   ;;  %s4786_s6 = inlined_call_operand.vmem [shape: f32[2,32,32], index: 6, kind: input, shape index: {}]   ;;  %s4787_s7 = inlined_call_operand.vmem [shape: f32[2,1,32], index: 7, kind: input, shape index: {}]   ;;  %s4788_s10 = inlined_call_operand.vmem [shape: f32[2,32,64], index: 10, kind: input, shape index: {}]   ;;  %s4789_s8 = inlined_call_operand.vmem [shape: f32[2,1,32], index: 8, kind: input, shape index: {}]   ;;  %s4790_s9 = inlined_call_operand.vmem [shape: f32[2,1,32], index: 9, kind: input, shape index: {}]   ;;  %s4791_s12 = inlined_call_operand.vmem [shape: f32[2,64,32], index: 12, kind: input, shape index: {}]   ;;  %s4792_s11 = inlined_call_operand.vmem [shape: f32[2,1,64], index: 11, kind: input, shape index: {}]   ;;  %s4793_s13 = inlined_call_operand.vmem [shape: f32[2,1,32], index: 13, kind: input, shape index: {}]   ;;  %s4794_s14 = inlined_call_operand.vmem [shape: f32[2,1,32], index: 14, kind: input, shape index: {}]   ;;  %s4795_s15 = inlined_call_operand.vmem [shape: f32[2,1,32], index: 15, kind: input, shape index: {}]   ;;  %s4796_s16 = inlined_call_operand.vmem [shape: f32[32,32], index: 16, kind: input, shape index: {}]   ;;  %s4797_s23 = inlined_call_operand.vmem [shape: f32[16,128], index: 23, kind: output, shape index: {1}]   ;;  %s4798_s18 = inlined_call_operand.vmem [shape: f32[32,32], index: 18, kind: input, shape index: {}]   ;;  %s4799_s17 = inlined_call_operand.vmem [shape: f32[1,32], index: 17, kind: input, shape index: {}]   ;;  %s4800_s20 = inlined_call_operand.vmem [shape: f32[32,128], index: 20, kind: input, shape index: {}]   ;;  %s4801_s19 = inlined_call_operand.vmem [shape: f32[1,32], index: 19, kind: input, shape index: {}]   ;;  %s4802_s21 = inlined_call_operand.vmem [shape: f32[1,128], index: 21, kind: input, shape index: {}]   ;;  %s4803_s22 = inlined_call_operand.vmem [shape: f32[2,128], index: 22, kind: output, shape index: {0}]  }
   0x1   :  { %4834 = sst [smem:[#allocation2_spill]] %s4780_s0  ;;  %vm4192_vm2 = vmpackc.low %vm221_vm1, %vm221_vm1  ;;  %s4826_s25 = smov 56   ;;  %vm1325_vm5 = vcmask 523264   ;;  %vm4011_vm6 = vmmov 0   ;;  %vm2837_vm7 = vcmask 392192   ;;  %vm2842_vm8 = vcmask 654336  }
   0x2   :  { %4835 = sst [smem:[#allocation3_spill]] %s4781_s4  ;;  %s4843_s24 = sld [smem:[#allocation2_spill]]  ;;  %vm2845_vm9 = vcmask 785408   ;;  %vm2856_vm10 = vcmask 1040384   ;;  %vm2848_vm11 = vcmask 916480  }
   0x3   :  { %4836 = sst [smem:[#allocation4_spill]] %s4782_s2  ;;  %s4844_s2 = sld [smem:[#allocation3_spill]] }
   0x4   :  { %4837 = sst [smem:[#allocation5_spill]] %s4783_s3  ;;  %s4845_s30 = sld [smem:[#allocation4_spill]] }
   0x5   :  { %4838 = sst [smem:[#allocation6_spill]] %s4784_s5  ;;  %s4822_s4 = smov 80  }
   0x6   :  { %4839 = sst [smem:[#allocation7_spill]] %s4785_s1  ;;  %s4846_s1 = sld [smem:[#allocation5_spill]] }
   0x7   :  { %4840 = sst [smem:[#allocation8_spill]] %s4786_s6  ;;  %s4847_s6 = sld [smem:[#allocation6_spill]] }
   0x8   :  { %4841 = sst [smem:[#allocation9_spill]] %s4787_s7  ;;  %v75_v0 = vld [vmem:[%s4843_s24] sm:$0xff]  ;;  %v76_v1 = vld [vmem:[%s4843_s24 + $0x8] sm:$0xff]  ;;  %s4833_s7 = smov 88  }
   0x9   :  { %4842 = sst [smem:[#allocation10_spill]] %s4803_s22  ;;  %v80_v2 = vsel %vm79_vm0, %v75_v0, 0.0  ;;  %v83_v3 = vsel %vm79_vm0, %v76_v1, 0.0  ;;  %v123_v14 = vld [vmem:[%s4844_s2] sm:$0xff]  ;;  %v124_v15 = vld [vmem:[%s4844_s2 + $0x8] sm:$0xff]  ;;  %v125_v16 = vld [vmem:[%s4844_s2 + $0x10] sm:$0xff] }
   0xa   :  { %81 = vadd.xlane.f32.xlu0 %v80_v2  ;;  %v3621_v17 = vpack.c.bf16 %v124_v15, %v123_v14  ;;  %v126_v18 = vld [vmem:[%s4844_s2 + $0x18] sm:$0xff]  ;;  %v3121_v27 = vld [vmem:[%s4845_s30] ss:$0 sm:$0xff]  ;;  %s4850_s0 = sld [smem:[#allocation7_spill]]  ;;  %s4824_s24 = smov 64  }
   0xb   :  { %v3625_v19 = vpack.c.bf16 %v126_v18, %v125_v16  ;;  %s4818_s26 = smov 48   ;;  %s4814_s29 = smov 104  }
   0xc   :  { %3622 = vmatprep.subr.bf16.mxu0 %v3621_v17  ;;  %v3122_v29 = vld [vmem:[%s4846_s1] ss:$0 sm:$0xff]  ;;  %s4820_s1 = smov 112   ;;  %s4810_s3 = smov 72  }
   0xd   :  { %3624 = vmatpush3.bf16.msra.mxu0 %v3621_v17  ;;  %v3123_v36 = vld [vmem:[%s4847_s6] ss:$0 sm:$0xff]  ;;  %s4813_s5 = smov 40   ;;  %s4816_s30 = smov 8  }
   0xe   :  { %84 = vadd.xlane.f32.xlu0 %v83_v3  ;;  %3626 = vmatprep.subr.bf16.mxu0 %v3625_v19 }
  0x10   :  { %v4205_v49 = vld [vmem:[%s4850_s0] sm:$0xff]  ;;  %v4210_v52 = vld [vmem:[%s4850_s0 + $0x8] sm:$0xff] }
  0x11   :  { %3628 = vmatpush3.bf16.msra.mxu0 %v3625_v19 }
  0x97   :  { %v82_v4 = vpop.xlane.xlu0 %81 }
  0x98   :  { %v87_v5 = vmul.f32 0.03125, %v82_v4 }
  0x9a   :  { %v89_v6 = vsub.f32 %v75_v0, %v87_v5 }
  0x9b   :  { %v85_v7 = vpop.xlane.xlu0 %84 }
  0x9c   :  { %v88_v8 = vmul.f32 0.03125, %v85_v7  ;;  %v91_v9 = vmul.f32 %v89_v6, %v89_v6 }
  0x9e   :  { %v90_v10 = vsub.f32 %v76_v1, %v88_v8  ;;  %v93_v11 = vsel %vm79_vm0, %v91_v9, 0.0 }
  0x9f   :  { %94 = vadd.xlane.f32.xlu1 %v93_v11 }
  0xa0   :  { %v92_v12 = vmul.f32 %v90_v10, %v90_v10 }
  0xa2   :  { %v96_v13 = vsel %vm79_vm0, %v92_v12, 0.0 }
  0xa3   :  { %97 = vadd.xlane.f32.xlu1 %v96_v13 }
 0x12c   :  { %v95_v20 = vpop.xlane.xlu1 %94 }
 0x12d   :  { %v99_v21 = vmul.f32 0.03125, %v95_v20 }
 0x12f   :  { %v101_v22 = vadd.f32 1e-12, %v99_v21 }
 0x130   :  { %v98_v23 = vpop.xlane.xlu1 %97 }
 0x131   :  { %3897 = vrsqrt.f32 %v101_v22  ;;  %v100_v24 = vmul.f32 0.03125, %v98_v23 }
 0x133   :  { %v102_v25 = vadd.f32 1e-12, %v100_v24 }
 0x135   :  { %3899 = vrsqrt.f32 %v102_v25 }
 0x13b   :  { %v3898_v26 = vpop.eup %3897 }
 0x13c   :  { %v105_v28 = vmul.f32 %v3898_v26, %v89_v6 }
 0x13e   :  { %v113_v30 = vmul.f32 %v3121_v27, %v105_v28 }
 0x13f   :  { %v3900_v31 = vpop.eup %3899 }
 0x140   :  { %v106_v32 = vmul.f32 %v3900_v31, %v90_v10  ;;  %v4161_v33 = vadd.f32 %v3122_v29, %v113_v30 }
 0x142   :  { %v114_v34 = vmul.f32 %v3121_v27, %v106_v32  ;;  %3380 = vmatprep.mubr.msk.f32.mxu0 %vm79_vm0, %v4161_v33 }
 0x144   :  { %v4165_v35 = vadd.f32 %v3122_v29, %v114_v34 }
 0x146   :  { %3381 = vmatmul.mubr.msk.f32.vlgmr.msra.gmra.mrb[0].mxu0 %vm79_vm0, %v4165_v35 }
 0x219   :  { %v3382_v37 = vpop.f32.mrb[0].mxu0 }
 0x21a   :  { %v4172_v38 = vadd.f32 %v3382_v37, %v3123_v36  ;;  %v206_v39 = vpop.f32.mrb[1].mxu0 }
 0x21b   :  { %v4174_v40 = vadd.f32 %v3123_v36, %v206_v39 }
 0x21d   :  { %3387 = vmatprep.mubr.msk.f32.mxu1 %vm221_vm1, %v4174_v40  ;;  %v4180_v41 = vpack.i.bf16 %v4172_v38, %v4174_v40 }
 0x21f   :  { %3818 = vrot.lane.b32.xlu0 %v4180_v41, %s4831_s27  ;;  %s4857_s27 = smov 64  }
 0x223   :  { %3828 = vrot.lane.b32.xlu0 %v4180_v41, %s4833_s7  ;;  %s4858_s7 = smov 80  }
 0x227   :  { %419 = vrot.lane.b32.xlu0 %v4174_v40, %s4829_s28 }
 0x22b   :  { %421 = vrot.lane.b32.xlu0 %v4172_v38, %s4829_s28  ;;  %s4865_s28 = smov 16  }
 0x291   :  { %v3819_v42 = vpop.permute.xlu0 %3818 }
 0x292   :  { %v3821_v43 = vunpack.i.h.bf16 %v3819_v42  ;;  %v3820_v44 = vunpack.i.l.bf16 %v3819_v42 }
 0x294   :  { %v3629_v46 = vpack.c.bf16 %v3821_v43, %v3820_v44 }
 0x295   :  { %v3829_v5 = vpop.permute.xlu0 %3828 }
 0x296   :  { %3631 = vmatprep.subr.msk.bf16.mxu1 %vm4192_vm2, %v3629_v46  ;;  %v3831_v7 = vunpack.i.h.bf16 %v3829_v5  ;;  %v3830_v8 = vunpack.i.l.bf16 %v3829_v5 }
 0x297   :  { %3634 = vmatpush3.bf16.xpose.msk.msra.mxu1 %vm4192_vm2, %v3629_v46 }
 0x298   :  { %v3639_v12 = vpack.c.bf16 %v3831_v7, %v3830_v8 }
 0x299   :  { %v420_v17 = vpop.permute.xlu0 %419 }
 0x29d   :  { %v422_v18 = vpop.permute.xlu0 %421 }
 0x29e   :  { %3388 = vmatmul.mubr.msk.f32.vlgmr.msra.gmra.mrb[0].mxu1 %vm221_vm1, %v4172_v38 }
 0x371   :  { %v3389_v47 = vpop.f32.mrb[0].mxu1 }
 0x372   :  { %v296_v48 = vpop.f32.mrb[1].mxu1  ;;  %v306_v50 = vmul.f32 0.35355338, %v3389_v47 }
 0x373   :  { %v305_v51 = vmul.f32 0.35355338, %v296_v48 }
 0x374   :  { %v308_v55 = vadd.f32 %v306_v50, %v4210_v52 }
 0x375   :  { %v307_v53 = vadd.f32 %v305_v51, %v4205_v49 }
 0x376   :  { %v313_v56 = vsel %vm309_vm3, %v308_v55, -inf }
 0x377   :  { %v310_v54 = vsel %vm309_vm3, %v307_v53, -inf }
 0x378   :  { %311 = vmax.xlane.f32.xlu1 %v310_v54 }
 0x37c   :  { %314 = vmax.xlane.f32.xlu1 %v313_v56 }
 0x405   :  { %v312_v57 = vpop.xlane.xlu1 %311 }
 0x406   :  { %v316_v58 = vsub.f32 %v307_v53, %v312_v57 }
 0x408   :  { %v318_v61 = vmul.f32 1.442695, %v316_v58 }
 0x409   :  { %v315_v59 = vpop.xlane.xlu1 %314 }
 0x40a   :  { %v317_v60 = vsub.f32 %v308_v55, %v315_v59 }
 0x40c   :  { %v320_v62 = vmul.f32 1.442695, %v317_v60 }
 0x40e   :  { %3901 = vpow2.f32 %v320_v62 }
 0x40f   :  { %3903 = vpow2.f32 %v318_v61 }
 0x418   :  { %v3902_v63 = vpop.eup %3901 }
 0x419   :  { %v325_v0 = vsel %vm309_vm3, %v3902_v63, 0.0  ;;  %v3904_v1 = vpop.eup %3903 }
 0x41a   :  { %326 = vadd.xlane.f32.xlu1 %v325_v0  ;;  %v322_v2 = vsel %vm309_vm3, %v3904_v1, 0.0 }
 0x41e   :  { %323 = vadd.xlane.f32.xlu1 %v322_v2 }
 0x42f   :  { %3823 = vrot.lane.b32.xlu1 %v4180_v41, %s4824_s24  ;;  %s4860_s24 = smov 48  }
 0x4a7   :  { %v327_v3 = vpop.xlane.xlu1 %326 }
 0x4a8   :  { %3905 = vrcp.f32 %v327_v3 }
 0x4ab   :  { %v324_v4 = vpop.xlane.xlu1 %323 }
 0x4ac   :  { %3907 = vrcp.f32 %v324_v4 }
 0x4af   :  { %v3824_v6 = vpop.permute.xlu1 %3823 }
 0x4b0   :  { %v3826_v9 = vunpack.i.h.bf16 %v3824_v6  ;;  %v3825_v10 = vunpack.i.l.bf16 %v3824_v6 }
 0x4b2   :  { %v3635_v11 = vpack.c.bf16 %v3826_v9, %v3825_v10  ;;  %v3906_v13 = vpop.eup %3905 }
 0x4b3   :  { %v4224_v16 = vmul.f32 %v3906_v13, %v3902_v63 }
 0x4b4   :  { %3636 = vmatprep.subr.bf16.mxu1 %v3635_v11 }
 0x4b5   :  { %3638 = vmatpush3.bf16.msra.mxu1 %v3635_v11 }
 0x4b6   :  { %v3908_v14 = vpop.eup %3907  ;;  %3641 = vmatprep.subr.msk.bf16.mxu1 %vm4192_vm2, %v3639_v12 }
 0x4b7   :  { %v4222_v15 = vmul.f32 %v3908_v14, %v3904_v1 }
 0x4b9   :  { %3394 = vmatprep.mubr.msk.f32.mxu1 %vm309_vm3, %v4222_v15 }
 0x4ba   :  { %3395 = vmatmul.mubr.msk.f32.vlgmr.msra.gmra.mrb[2].mxu1 %vm309_vm3, %v4224_v16 }
 0x4bb   :  { %3401 = vmatprep.mubr.msk.f32.mxu1 %vm221_vm1, %v420_v17 }
 0x4be   :  { %3644 = vmatpush3.bf16.xpose.msk.msra.mxu1 %vm4192_vm2, %v3639_v12 }
 0x4c5   :  { %3402 = vmatmul.mubr.msk.f32.vlgmr.msra.gmra.mrb[4].mxu1 %vm221_vm1, %v422_v18 }
 0x58d   :  { %v4234_v19 = vpop.f32.mrb[2].mxu1 }
 0x58e   :  { %v4236_v20 = vpop.f32.mrb[3].mxu1 }
 0x598   :  { %v3403_v21 = vpop.f32.mrb[4].mxu1 }
 0x599   :  { %v511_v22 = vmul.f32 0.35355338, %v3403_v21  ;;  %v501_v23 = vpop.f32.mrb[5].mxu1 }
 0x59a   :  { %v510_v24 = vmul.f32 0.35355338, %v501_v23 }
 0x59b   :  { %v513_v25 = vadd.f32 %v511_v22, %v4210_v52 }
 0x59c   :  { %v512_v26 = vadd.f32 %v510_v24, %v4205_v49 }
 0x59d   :  { %v517_v27 = vsel %vm309_vm3, %v513_v25, -inf }
 0x59e   :  { %518 = vmax.xlane.f32.xlu0 %v517_v27  ;;  %v514_v28 = vsel %vm309_vm3, %v512_v26, -inf }
 0x59f   :  { %515 = vmax.xlane.f32.xlu1 %v514_v28 }
 0x5b0   :  { %3833 = vrot.lane.b32.xlu1 %v4180_v41, %s4826_s25  ;;  %s4853_s25 = smov 88  }
 0x5b4   :  { %623 = vrot.lane.b32.xlu1 %v4174_v40, %s4820_s1 }
 0x5b8   :  { %625 = vrot.lane.b32.xlu1 %v4172_v38, %s4820_s1  ;;  %s4852_s1 = sld [smem:[#allocation9_spill]] }
 0x62b   :  { %v519_v29 = vpop.xlane.xlu0 %518 }
 0x62c   :  { %v521_v30 = vsub.f32 %v513_v25, %v519_v29  ;;  %v516_v31 = vpop.xlane.xlu1 %515 }
 0x62d   :  { %v520_v32 = vsub.f32 %v512_v26, %v516_v31 }
 0x62e   :  { %v524_v34 = vmul.f32 1.442695, %v521_v30 }
 0x62f   :  { %v522_v36 = vmul.f32 1.442695, %v520_v32 }
 0x630   :  { %3909 = vpow2.f32 %v524_v34  ;;  %v3834_v37 = vpop.permute.xlu1 %3833 }
 0x631   :  { %v3836_v39 = vunpack.i.h.bf16 %v3834_v37  ;;  %v3835_v42 = vunpack.i.l.bf16 %v3834_v37  ;;  %3911 = vpow2.f32 %v522_v36 }
 0x633   :  { %v3645_v43 = vpack.c.bf16 %v3836_v39, %v3835_v42 }
 0x634   :  { %v624_v61 = vpop.permute.xlu1 %623 }
 0x635   :  { %3646 = vmatprep.subr.bf16.mxu0 %v3645_v43 }
 0x636   :  { %3648 = vmatpush3.bf16.msra.mxu0 %v3645_v43 }
 0x638   :  { %v626_v62 = vpop.permute.xlu1 %625 }
 0x63a   :  { %v3910_v44 = vpop.eup %3909 }
 0x63b   :  { %v529_v46 = vsel %vm309_vm3, %v3910_v44, 0.0  ;;  %v3912_v47 = vpop.eup %3911 }
 0x63c   :  { %530 = vadd.xlane.f32.xlu0 %v529_v46  ;;  %v526_v48 = vsel %vm309_vm3, %v3912_v47, 0.0 }
 0x640   :  { %527 = vadd.xlane.f32.xlu0 %v526_v48 }
 0x656   :  { %3838 = vrot.lane.b32.xlu0 %v4180_v41, %s4822_s4  ;;  %s4854_s4 = smov 96  }
 0x6c9   :  { %v531_v50 = vpop.xlane.xlu0 %530 }
 0x6ca   :  { %3913 = vrcp.f32 %v531_v50 }
 0x6cd   :  { %v528_v51 = vpop.xlane.xlu0 %527 }
 0x6ce   :  { %3915 = vrcp.f32 %v528_v51 }
 0x6d1   :  { %v3839_v53 = vpop.permute.xlu0 %3838 }
 0x6d2   :  { %v3841_v54 = vunpack.i.h.bf16 %v3839_v53  ;;  %v3840_v55 = vunpack.i.l.bf16 %v3839_v53 }
 0x6d4   :  { %v3649_v56 = vpack.c.bf16 %v3841_v54, %v3840_v55  ;;  %v3914_v57 = vpop.eup %3913 }
 0x6d5   :  { %v4256_v60 = vmul.f32 %v3914_v57, %v3910_v44 }
 0x6d6   :  { %3651 = vmatprep.subr.msk.bf16.mxu0 %vm4192_vm2, %v3649_v56 }
 0x6d8   :  { %v3916_v58 = vpop.eup %3915 }
 0x6d9   :  { %v4254_v59 = vmul.f32 %v3916_v58, %v3912_v47 }
 0x6db   :  { %3408 = vmatprep.mubr.msk.f32.mxu0 %vm309_vm3, %v4254_v59 }
 0x6dc   :  { %3409 = vmatmul.mubr.msk.f32.vlgmr.msra.gmra.mrb[2].mxu0 %vm309_vm3, %v4256_v60 }
 0x6dd   :  { %3654 = vmatpush3.bf16.xpose.msk.msra.mxu0 %vm4192_vm2, %v3649_v56  ;;  %3415 = vmatprep.mubr.msk.f32.mxu0 %vm221_vm1, %v624_v61 }
 0x6e4   :  { %3416 = vmatmul.mubr.msk.f32.vlgmr.msra.gmra.mrb[4].mxu0 %vm221_vm1, %v626_v62 }
 0x7af   :  { %v4266_v63 = vpop.f32.mrb[2].mxu0 }
 0x7b0   :  { %v4268_v0 = vpop.f32.mrb[3].mxu0 }
 0x7b7   :  { %v3417_v1 = vpop.f32.mrb[4].mxu0 }
 0x7b8   :  { %v715_v2 = vmul.f32 0.35355338, %v3417_v1  ;;  %v705_v3 = vpop.f32.mrb[5].mxu0 }
 0x7b9   :  { %v714_v4 = vmul.f32 0.35355338, %v705_v3 }
 0x7ba   :  { %v717_v5 = vadd.f32 %v715_v2, %v4210_v52 }
 0x7bb   :  { %v716_v6 = vadd.f32 %v714_v4, %v4205_v49 }
 0x7bc   :  { %v721_v7 = vsel %vm309_vm3, %v717_v5, -inf }
 0x7bd   :  { %722 = vmax.xlane.f32.xlu0 %v721_v7  ;;  %v718_v8 = vsel %vm309_vm3, %v716_v6, -inf }
 0x7be   :  { %719 = vmax.xlane.f32.xlu1 %v718_v8 }
 0x7cf   :  { %3843 = vrot.lane.b32.xlu1 %v4180_v41, %s4818_s26  ;;  %s4856_s26 = smov 56  }
 0x7d3   :  { %827 = vrot.lane.b32.xlu1 %v4174_v40, %s4814_s29 }
 0x7d7   :  { %829 = vrot.lane.b32.xlu1 %v4172_v38, %s4814_s29  ;;  %s4851_s29 = sld [smem:[#allocation8_spill]] }
 0x84a   :  { %v723_v9 = vpop.xlane.xlu0 %722 }
 0x84b   :  { %v725_v10 = vsub.f32 %v717_v5, %v723_v9  ;;  %v720_v11 = vpop.xlane.xlu1 %719 }
 0x84c   :  { %v724_v12 = vsub.f32 %v716_v6, %v720_v11 }
 0x84d   :  { %v728_v13 = vmul.f32 1.442695, %v725_v10 }
 0x84e   :  { %v726_v14 = vmul.f32 1.442695, %v724_v12 }
 0x84f   :  { %3917 = vpow2.f32 %v728_v13  ;;  %v3844_v17 = vpop.permute.xlu1 %3843  ;;  %v1063_v13 = vld [vmem:[%s4851_s29 + $0x8] sm:$0xff] }
 0x850   :  { %v3846_v18 = vunpack.i.h.bf16 %v3844_v17  ;;  %v3845_v21 = vunpack.i.l.bf16 %v3844_v17  ;;  %3919 = vpow2.f32 %v726_v14  ;;  %v1064_v14 = vld [vmem:[%s4851_s29 + $0x10] sm:$0xff] }
 0x852   :  { %v3655_v22 = vpack.c.bf16 %v3846_v18, %v3845_v21  ;;  %v1065_v18 = vld [vmem:[%s4851_s29 + $0x18] sm:$0xff] }
 0x853   :  { %v828_v37 = vpop.permute.xlu1 %827  ;;  %v3673_v21 = vpack.c.bf16 %v1065_v18, %v1064_v14 }
 0x854   :  { %3656 = vmatprep.subr.bf16.mxu1 %v3655_v22 }
 0x855   :  { %3658 = vmatpush3.bf16.msra.mxu1 %v3655_v22 }
 0x857   :  { %v830_v39 = vpop.permute.xlu1 %829 }
 0x859   :  { %v3918_v23 = vpop.eup %3917 }
 0x85a   :  { %v733_v40 = vsel %vm309_vm3, %v3918_v23, 0.0  ;;  %v3920_v24 = vpop.eup %3919 }
 0x85b   :  { %734 = vadd.xlane.f32.xlu0 %v733_v40  ;;  %v730_v38 = vsel %vm309_vm3, %v3920_v24, 0.0 }
 0x85f   :  { %731 = vadd.xlane.f32.xlu0 %v730_v38 }
 0x875   :  { %3848 = vrot.lane.b32.xlu0 %v4180_v41, %s4810_s3  ;;  %s4811_s3 = smov 16  }
 0x8e8   :  { %v735_v25 = vpop.xlane.xlu0 %734 }
 0x8e9   :  { %3921 = vrcp.f32 %v735_v25 }
 0x8ec   :  { %v732_v26 = vpop.xlane.xlu0 %731 }
 0x8ed   :  { %3923 = vrcp.f32 %v732_v26 }
 0x8f0   :  { %v3849_v27 = vpop.permute.xlu0 %3848 }
 0x8f1   :  { %v3851_v28 = vunpack.i.h.bf16 %v3849_v27  ;;  %v3850_v29 = vunpack.i.l.bf16 %v3849_v27 }
 0x8f3   :  { %v3659_v30 = vpack.c.bf16 %v3851_v28, %v3850_v29  ;;  %v3922_v31 = vpop.eup %3921 }
 0x8f4   :  { %v4288_v36 = vmul.f32 %v3922_v31, %v3918_v23 }
 0x8f5   :  { %3661 = vmatprep.subr.msk.bf16.mxu1 %vm4192_vm2, %v3659_v30 }
 0x8f7   :  { %v3924_v32 = vpop.eup %3923 }
 0x8f8   :  { %v4286_v34 = vmul.f32 %v3924_v32, %v3920_v24 }
 0x8fa   :  { %3422 = vmatprep.mubr.msk.f32.mxu1 %vm309_vm3, %v4286_v34 }
 0x8fb   :  { %3423 = vmatmul.mubr.msk.f32.vlgmr.msra.gmra.mrb[6].mxu1 %vm309_vm3, %v4288_v36 }
 0x8fc   :  { %3664 = vmatpush3.bf16.xpose.msk.msra.mxu1 %vm4192_vm2, %v3659_v30  ;;  %3429 = vmatprep.mubr.msk.f32.mxu1 %vm221_vm1, %v828_v37 }
 0x903   :  { %3430 = vmatmul.mubr.msk.f32.vlgmr.msra.gmra.mrb[8].mxu1 %vm221_vm1, %v830_v39 }
 0x9ce   :  { %v3424_v42 = vpop.f32.mrb[6].mxu1 }
 0x9cf   :  { %v818_v43 = vpop.f32.mrb[7].mxu1 }
 0x9d6   :  { %v3431_v44 = vpop.f32.mrb[8].mxu1 }
 0x9d7   :  { %v919_v46 = vmul.f32 0.35355338, %v3431_v44  ;;  %v909_v47 = vpop.f32.mrb[9].mxu1 }
 0x9d8   :  { %v918_v48 = vmul.f32 0.35355338, %v909_v47 }
 0x9d9   :  { %v921_v50 = vadd.f32 %v919_v46, %v4210_v52 }
 0x9da   :  { %v920_v51 = vadd.f32 %v918_v48, %v4205_v49 }
 0x9db   :  { %v925_v53 = vsel %vm309_vm3, %v921_v50, -inf }
 0x9dc   :  { %926 = vmax.xlane.f32.xlu0 %v925_v53  ;;  %v922_v54 = vsel %vm309_vm3, %v920_v51, -inf }
 0x9dd   :  { %923 = vmax.xlane.f32.xlu1 %v922_v54 }
 0x9ee   :  { %3853 = vrot.lane.b32.xlu1 %v4180_v41, %s4813_s5  ;;  %s4859_s5 = smov 112  }
 0x9f2   :  { %1035 = vrot.lane.b32.xlu1 %v4266_v63, %s4816_s30 }
 0x9f6   :  { %1041 = vrot.lane.b32.xlu1 %v818_v43, %s4811_s3 }
 0x9fa   :  { %1043 = vrot.lane.b32.xlu1 %v3424_v42, %s4811_s3  ;;  %s4827_s3 = smov 24  }
 0xa69   :  { %v927_v55 = vpop.xlane.xlu0 %926 }
 0xa6a   :  { %v929_v56 = vsub.f32 %v921_v50, %v927_v55  ;;  %v924_v57 = vpop.xlane.xlu1 %923 }
 0xa6b   :  { %v928_v58 = vsub.f32 %v920_v51, %v924_v57 }
 0xa6c   :  { %v932_v61 = vmul.f32 1.442695, %v929_v56 }
 0xa6d   :  { %v930_v62 = vmul.f32 1.442695, %v928_v58 }
 0xa6e   :  { %v3854_v1 = vpop.permute.xlu1 %3853 }
 0xa6f   :  { %3925 = vpow2.f32 %v930_v62  ;;  %v3856_v2 = vunpack.i.h.bf16 %v3854_v1  ;;  %v3855_v3 = vunpack.i.l.bf16 %v3854_v1  ;;  %v1201_v62 = vld [vmem:[%s4788_s10 + $0x8] sm:$0xff] }
 0xa70   :  { %3927 = vpow2.f32 %v932_v61 }
 0xa71   :  { %v3665_v41 = vpack.c.bf16 %v3856_v2, %v3855_v3  ;;  %v1202_v2 = vld [vmem:[%s4788_s10 + $0x10] sm:$0xff]  ;;  %v1203_v3 = vld [vmem:[%s4788_s10 + $0x18] sm:$0xff] }
 0xa72   :  { %v1036_v40 = vpop.permute.xlu1 %1035 }
 0xa73   :  { %3666 = vmatprep.subr.bf16.mxu0 %v3665_v41  ;;  %v1056_v28 = vsel %vm221_vm1, %v4234_v19, %v1036_v40  ;;  %v1310_v40 = vld [vmem:[%s4791_s12] sm:$0xff] }
 0xa74   :  { %3668 = vmatpush3.bf16.msra.mxu0 %v3665_v41  ;;  %v3681_v41 = vpack.c.bf16 %v1203_v3, %v1202_v2  ;;  %v3158_v3 = vld [vmem:[%s4793_s13] ss:$0 sm:$0xff] }
 0xa76   :  { %v1042_v24 = vpop.permute.xlu1 %1041 }
 0xa79   :  { %v3926_v63 = vpop.eup %3925 }
 0xa7a   :  { %v934_v4 = vsel %vm309_vm3, %v3926_v63, 0.0  ;;  %v3928_v5 = vpop.eup %3927  ;;  %v1044_v25 = vpop.permute.xlu1 %1043 }
 0xa7b   :  { %935 = vadd.xlane.f32.xlu0 %v934_v4  ;;  %v937_v6 = vsel %vm309_vm3, %v3928_v5, 0.0  ;;  %v1058_v31 = vsel %vm309_vm3, %v1056_v28, %v1044_v25  ;;  %v1312_v25 = vld [vmem:[%s4791_s12 + $0x10] sm:$0xff] }
 0xa7f   :  { %938 = vadd.xlane.f32.xlu0 %v937_v6 }
 0xa95   :  { %1033 = vrot.lane.b32.xlu0 %v4268_v0, %s4816_s30  ;;  %v1062_v0 = vld [vmem:[%s4851_s29] sm:$0xff] }
 0xa96   :  { %v3669_v17 = vpack.c.bf16 %v1063_v13, %v1062_v0  ;;  %v3154_v13 = vld [vmem:[%s4790_s9] ss:$0 sm:$0xff] }
 0xa98   :  { %3670 = vmatprep.subr.bf16.mxu0 %v3669_v17 }
 0xb08   :  { %v936_v7 = vpop.xlane.xlu0 %935 }
 0xb09   :  { %3929 = vrcp.f32 %v936_v7 }
 0xb0c   :  { %v939_v8 = vpop.xlane.xlu0 %938 }
 0xb0d   :  { %3931 = vrcp.f32 %v939_v8 }
 0xb10   :  { %v1034_v38 = vpop.permute.xlu0 %1033 }
 0xb11   :  { %v1055_v26 = vsel %vm221_vm1, %v4236_v20, %v1034_v38  ;;  %v3150_v20 = vld [vmem:[%s4852_s1] ss:$0 sm:$0xff] }
 0xb12   :  { %v1057_v29 = vsel %vm309_vm3, %v1055_v26, %v1042_v24  ;;  %v1311_v24 = vld [vmem:[%s4791_s12 + $0x8] sm:$0xff]  ;;  %v1313_v26 = vld [vmem:[%s4791_s12 + $0x18] sm:$0xff] }
 0xb13   :  { %v3930_v9 = vpop.eup %3929  ;;  %v3685_v38 = vpack.c.bf16 %v1311_v24, %v1310_v40  ;;  %v3689_v28 = vpack.c.bf16 %v1313_v26, %v1312_v25  ;;  %v3165_v26 = vld [vmem:[%s4844_s2 + $0x30] sm:$0xff] }
 0xb14   :  { %v4312_v10 = vmul.f32 %v3930_v9, %v3926_v63 }
 0xb16   :  { %3436 = vmatprep.mubr.msk.f32.mxu0 %vm309_vm3, %v4312_v10 }
 0xb17   :  { %v3932_v11 = vpop.eup %3931 }
 0xb18   :  { %v4316_v12 = vmul.f32 %v3932_v11, %v3928_v5  ;;  %v3153_v11 = vld [vmem:[%s4789_s8] ss:$0 sm:$0xff] }
 0xb1a   :  { %3437 = vmatmul.mubr.msk.f32.vlgmr.msra.gmra.mrb[6].mxu0 %vm309_vm3, %v4316_v12 }
 0xb1b   :  { %3672 = vmatpush3.bf16.msra.mxu0 %v3669_v17 }
 0xb1c   :  { %3674 = vmatprep.subr.bf16.mxu0 %v3673_v21 }
 0xb1f   :  { %3676 = vmatpush3.bf16.msra.mxu0 %v3673_v21 }
 0xb20   :  { %3686 = vmatprep.subr.bf16.mxu0 %v3685_v38 }
 0xbed   :  { %v3438_v22 = vpop.f32.mrb[6].mxu0 }
 0xbee   :  { %1051 = vrot.lane.b32.xlu1 %v3438_v22, %s4827_s3  ;;  %v1022_v23 = vpop.f32.mrb[7].mxu0 }
 0xbef   :  { %1049 = vrot.lane.b32.xlu0 %v1022_v23, %s4827_s3 }
 0xc60   :  { %v1052_v27 = vpop.permute.xlu1 %1051 }
 0xc61   :  { %v1050_v30 = vpop.permute.xlu0 %1049  ;;  %v1061_v37 = vsel %vm1059_vm4, %v1058_v31, %v1052_v27  ;;  %v1314_v27 = vld [vmem:[%s4791_s12 + $0x20] sm:$0xff]  ;;  %v1316_v31 = vld [vmem:[%s4791_s12 + $0x30] sm:$0xff] }
 0xc62   :  { %v1060_v32 = vsel %vm1059_vm4, %v1057_v29, %v1050_v30  ;;  %v1315_v29 = vld [vmem:[%s4791_s12 + $0x28] sm:$0xff] }
 0xc63   :  { %3447 = vmatprep.mubr.msk.f32.mxu0 %vm79_vm0, %v1060_v32  ;;  %v3693_v30 = vpack.c.bf16 %v1315_v29, %v1314_v27  ;;  %v1317_v32 = vld [vmem:[%s4791_s12 + $0x38] sm:$0xff] }
 0xc64   :  { %3448 = vmatmul.mubr.msk.f32.vlgmr.msra.gmra.mrb[8].mxu0 %vm79_vm0, %v1061_v37  ;;  %v3697_v37 = vpack.c.bf16 %v1317_v32, %v1316_v31  ;;  %v3166_v27 = vld [vmem:[%s4844_s2 + $0x38] sm:$0xff] }
 0xc65   :  { %3688 = vmatpush3.bf16.msra.mxu0 %v3685_v38  ;;  %v3164_v38 = vld [vmem:[%s4844_s2 + $0x28] sm:$0xff] }
 0xc66   :  { %3690 = vmatprep.subr.bf16.mxu0 %v3689_v28 }
 0xc69   :  { %3692 = vmatpush3.bf16.msra.mxu0 %v3689_v28  ;;  %v3705_v28 = vpack.c.bf16 %v3166_v27, %v3165_v26 }
 0xc6a   :  { %3694 = vmatprep.subr.bf16.mxu0 %v3693_v30 }
 0xc6d   :  { %3696 = vmatpush3.bf16.msra.mxu0 %v3693_v30 }
 0xc6e   :  { %3698 = vmatprep.subr.bf16.mxu0 %v3697_v37 }
 0xc71   :  { %3700 = vmatpush3.bf16.msra.mxu0 %v3697_v37 }
 0xd37   :  { %v3449_v39 = vpop.f32.mrb[8].mxu0 }
 0xd38   :  { %v1151_v42 = vadd.f32 %v3449_v39, %v3150_v20  ;;  %v1145_v19 = vpop.f32.mrb[9].mxu0 }
 0xd39   :  { %v1146_v43 = vadd.f32 %v3150_v20, %v1145_v19  ;;  %v3155_v20 = vld [vmem:[%s4792_s11] ss:$0 sm:$0xff] }
 0xd3a   :  { %v1155_v44 = vadd.f32 %v1151_v42, %v4165_v35 }
 0xd3b   :  { %v1154_v46 = vadd.f32 %v1146_v43, %v4161_v33  ;;  %v1200_v33 = vld [vmem:[%s4788_s10] sm:$0xff] }
 0xd3c   :  { %v1161_v47 = vsel %vm79_vm0, %v1155_v44, 0.0  ;;  %v3677_v1 = vpack.c.bf16 %v1201_v62, %v1200_v33 }
 0xd3d   :  { %1162 = vadd.xlane.f32.xlu1 %v1161_v47  ;;  %v1158_v48 = vsel %vm79_vm0, %v1154_v46, 0.0 }
 0xd3e   :  { %1159 = vadd.xlane.f32.xlu0 %v1158_v48  ;;  %3678 = vmatprep.subr.bf16.mxu1 %v3677_v1 }
 0xd3f   :  { %3680 = vmatpush3.bf16.msra.mxu1 %v3677_v1 }
 0xd40   :  { %3682 = vmatprep.subr.bf16.mxu1 %v3681_v41 }
 0xd43   :  { %3684 = vmatpush3.bf16.msra.mxu1 %v3681_v41 }
 0xdca   :  { %v1163_v50 = vpop.xlane.xlu1 %1162 }
 0xdcb   :  { %v1165_v51 = vmul.f32 0.03125, %v1163_v50  ;;  %v1160_v53 = vpop.xlane.xlu0 %1159 }
 0xdcc   :  { %v1164_v54 = vmul.f32 0.03125, %v1160_v53 }
 0xdcd   :  { %v1167_v55 = vsub.f32 %v1155_v44, %v1165_v51 }
 0xdce   :  { %v1166_v56 = vsub.f32 %v1154_v46, %v1164_v54 }
 0xdcf   :  { %v1169_v61 = vmul.f32 %v1167_v55, %v1167_v55 }
 0xdd0   :  { %v1168_v57 = vmul.f32 %v1166_v56, %v1166_v56 }
 0xdd1   :  { %v1173_v35 = vsel %vm79_vm0, %v1169_v61, 0.0 }
 0xdd2   :  { %v1170_v58 = vsel %vm79_vm0, %v1168_v57, 0.0 }
 0xdd3   :  { %1171 = vadd.xlane.f32.xlu0 %v1170_v58 }
 0xdd7   :  { %1174 = vadd.xlane.f32.xlu0 %v1173_v35 }
 0xe60   :  { %v1172_v63 = vpop.xlane.xlu0 %1171 }
 0xe61   :  { %v1176_v4 = vmul.f32 0.03125, %v1172_v63 }
 0xe63   :  { %v1178_v5 = vadd.f32 1e-12, %v1176_v4 }
 0xe64   :  { %v1175_v6 = vpop.xlane.xlu0 %1174 }
 0xe65   :  { %3933 = vrsqrt.f32 %v1178_v5  ;;  %v1177_v7 = vmul.f32 0.03125, %v1175_v6 }
 0xe67   :  { %v1179_v8 = vadd.f32 1e-12, %v1177_v7 }
 0xe69   :  { %3935 = vrsqrt.f32 %v1179_v8 }
 0xe6f   :  { %v3934_v9 = vpop.eup %3933 }
 0xe70   :  { %v1182_v0 = vmul.f32 %v3934_v9, %v1166_v56 }
 0xe72   :  { %v1190_v14 = vmul.f32 %v3153_v11, %v1182_v0 }
 0xe73   :  { %v3936_v17 = vpop.eup %3935 }
 0xe74   :  { %v1183_v18 = vmul.f32 %v3936_v17, %v1167_v55  ;;  %v1198_v21 = vadd.f32 %v3154_v13, %v1190_v14 }
 0xe76   :  { %v1191_v22 = vmul.f32 %v3153_v11, %v1183_v18  ;;  %3458 = vmatprep.mubr.msk.f32.mxu1 %vm79_vm0, %v1198_v21 }
 0xe78   :  { %v1199_v23 = vadd.f32 %v3154_v13, %v1191_v22 }
 0xe7a   :  { %3459 = vmatmul.mubr.msk.f32.vlgmr.msra.gmra.mrb[10].mxu1 %vm79_vm0, %v1199_v23 }
 0xf4d   :  { %v3460_v39 = vpop.f32.mrb[10].mxu1 }
 0xf4e   :  { %v1289_v42 = vadd.f32 %v3460_v39, %v3155_v20  ;;  %v1283_v19 = vpop.f32.mrb[11].mxu1 }
 0xf4f   :  { %v1284_v43 = vadd.f32 %v3155_v20, %v1283_v19 }
 0xf50   :  { %v1295_v44 = vmul.f32 0.044715, %v1289_v42  ;;  %v1293_v62 = vmul.f32 0.5, %v1289_v42 }
 0xf51   :  { %v1294_v46 = vmul.f32 0.044715, %v1284_v43  ;;  %v1292_v35 = vmul.f32 0.5, %v1284_v43 }
 0xf52   :  { %v1297_v47 = vmul.f32 %v1295_v44, %v1289_v42 }
 0xf53   :  { %v1296_v48 = vmul.f32 %v1294_v46, %v1284_v43  ;;  %v3162_v46 = vld [vmem:[%s4795_s15] ss:$0 sm:$0xff] }
 0xf54   :  { %v1299_v50 = vmul.f32 %v1297_v47, %v1289_v42 }
 0xf55   :  { %v1298_v51 = vmul.f32 %v1296_v48, %v1284_v43 }
 0xf56   :  { %v1301_v53 = vadd.f32 %v1299_v50, %v1289_v42  ;;  %v3161_v42 = vld [vmem:[%s4794_s14] ss:$0 sm:$0xff] }
 0xf57   :  { %v1300_v54 = vadd.f32 %v1298_v51, %v1284_v43 }
 0xf58   :  { %v1303_v55 = vmul.f32 0.7978846, %v1301_v53  ;;  %v3168_v53 = vld [vmem:[%s4847_s6 + $0x1] ss:$0 sm:$0xff]  ;;  %s4855_s6 = smov 120  }
 0xf59   :  { %v1302_v56 = vmul.f32 0.7978846, %v1300_v54 }
 0xf5a   :  { %3937 = vtanh.f32 %v1303_v55 }
 0xf5b   :  { %3939 = vtanh.f32 %v1302_v56 }
 0xf64   :  { %v3938_v57 = vpop.eup %3937 }
 0xf65   :  { %v3940_v58 = vpop.eup %3939  ;;  %v1307_v61 = vadd.f32 1.0, %v3938_v57 }
 0xf66   :  { %v1306_v33 = vadd.f32 1.0, %v3940_v58 }
 0xf67   :  { %v1309_v2 = vmul.f32 %v1307_v61, %v1293_v62 }
 0xf68   :  { %v1308_v1 = vmul.f32 %v1306_v33, %v1292_v35 }
 0xf6a   :  { %3477 = vmatprep.mubr.msk.f32.mxu0 %vm1325_vm5, %v1308_v1 }
 0xf6b   :  { %3478 = vmatmul.mubr.msk.f32.vlgmr.msra.gmra.mrb[10].mxu0 %vm1325_vm5, %v1309_v2 }
0x103e   :  { %v3479_v41 = vpop.f32.mrb[10].mxu0 }
0x103f   :  { %v1404_v63 = vadd.f32 %v3479_v41, %v3158_v3  ;;  %v1398_v4 = vpop.f32.mrb[11].mxu0 }
0x1040   :  { %v1399_v5 = vadd.f32 %v3158_v3, %v1398_v4 }
0x1041   :  { %v1408_v6 = vadd.f32 %v1404_v63, %v1199_v23 }
0x1042   :  { %v1407_v7 = vadd.f32 %v1399_v5, %v1198_v21  ;;  %v3163_v21 = vld [vmem:[%s4844_s2 + $0x20] sm:$0xff]  ;;  %s4866_s2 = smov 24  }
0x1043   :  { %v1414_v8 = vsel %vm79_vm0, %v1408_v6, 0.0  ;;  %v3701_v25 = vpack.c.bf16 %v3164_v38, %v3163_v21 }
0x1044   :  { %1415 = vadd.xlane.f32.xlu1 %v1414_v8  ;;  %v1411_v9 = vsel %vm79_vm0, %v1407_v7, 0.0 }
0x1045   :  { %1412 = vadd.xlane.f32.xlu0 %v1411_v9  ;;  %3702 = vmatprep.subr.bf16.mxu1 %v3701_v25 }
0x1046   :  { %3704 = vmatpush3.bf16.msra.mxu1 %v3701_v25 }
0x1047   :  { %3706 = vmatprep.subr.bf16.mxu1 %v3705_v28 }
0x104a   :  { %3708 = vmatpush3.bf16.msra.mxu1 %v3705_v28 }
0x10d1   :  { %v1416_v11 = vpop.xlane.xlu1 %1415 }
0x10d2   :  { %v1418_v0 = vmul.f32 0.03125, %v1416_v11  ;;  %v1413_v13 = vpop.xlane.xlu0 %1412 }
0x10d3   :  { %v1417_v14 = vmul.f32 0.03125, %v1413_v13 }
0x10d4   :  { %v1420_v17 = vsub.f32 %v1408_v6, %v1418_v0 }
0x10d5   :  { %v1419_v18 = vsub.f32 %v1407_v7, %v1417_v14 }
0x10d6   :  { %v1422_v22 = vmul.f32 %v1420_v17, %v1420_v17 }
0x10d7   :  { %v1421_v40 = vmul.f32 %v1419_v18, %v1419_v18 }
0x10d8   :  { %v1426_v24 = vsel %vm79_vm0, %v1422_v22, 0.0 }
0x10d9   :  { %1427 = vadd.xlane.f32.xlu1 %v1426_v24  ;;  %v1423_v23 = vsel %vm79_vm0, %v1421_v40, 0.0 }
0x10da   :  { %1424 = vadd.xlane.f32.xlu0 %v1423_v23 }
0x1166   :  { %v1428_v29 = vpop.xlane.xlu1 %1427 }
0x1167   :  { %v1430_v30 = vmul.f32 0.03125, %v1428_v29  ;;  %v1425_v31 = vpop.xlane.xlu0 %1424 }
0x1168   :  { %v1429_v32 = vmul.f32 0.03125, %v1425_v31 }
0x1169   :  { %v1432_v37 = vadd.f32 1e-12, %v1430_v30 }
0x116a   :  { %v1431_v20 = vadd.f32 1e-12, %v1429_v32 }
0x116b   :  { %3941 = vrsqrt.f32 %v1432_v37 }
0x116c   :  { %3943 = vrsqrt.f32 %v1431_v20 }
0x1175   :  { %v3942_v39 = vpop.eup %3941 }
0x1176   :  { %v3944_v19 = vpop.eup %3943  ;;  %v1436_v43 = vmul.f32 %v3942_v39, %v1420_v17 }
0x1177   :  { %v1435_v44 = vmul.f32 %v3944_v19, %v1419_v18 }
0x1178   :  { %v1444_v47 = vmul.f32 %v3161_v42, %v1436_v43 }
0x1179   :  { %v1443_v48 = vmul.f32 %v3161_v42, %v1435_v44 }
0x117a   :  { %v4429_v51 = vadd.f32 %v3162_v46, %v1444_v47 }
0x117b   :  { %v4427_v50 = vadd.f32 %v3162_v46, %v1443_v48 }
0x117d   :  { %3488 = vmatprep.mubr.msk.f32.mxu1 %vm79_vm0, %v4427_v50 }
0x117e   :  { %3489 = vmatmul.mubr.msk.f32.vlgmr.msra.gmra.mrb[12].mxu1 %vm79_vm0, %v4429_v51 }
0x1251   :  { %v3490_v54 = vpop.f32.mrb[12].mxu1 }
0x1252   :  { %v4438_v55 = vadd.f32 %v3490_v54, %v3168_v53  ;;  %v1538_v56 = vpop.f32.mrb[13].mxu1 }
0x1253   :  { %v4440_v57 = vadd.f32 %v3168_v53, %v1538_v56 }
0x1255   :  { %3495 = vmatprep.mubr.msk.f32.mxu1 %vm221_vm1, %v4440_v57  ;;  %v4446_v58 = vpack.i.bf16 %v4438_v55, %v4440_v57 }
0x1257   :  { %3863 = vrot.lane.b32.xlu1 %v4446_v58, %s4853_s25  ;;  %3858 = vrot.lane.b32.xlu0 %v4446_v58, %s4854_s4  ;;  %s4861_s25 = smov 104  }
0x125b   :  { %1749 = vrot.lane.b32.xlu1 %v4440_v57, %s4855_s6 }
0x125f   :  { %1751 = vrot.lane.b32.xlu1 %v4438_v55, %s4855_s6  ;;  %s4863_s6 = smov 40  }
0x12c9   :  { %v3864_v61 = vpop.permute.xlu1 %3863  ;;  %v3859_v35 = vpop.permute.xlu0 %3858 }
0x12ca   :  { %v3866_v33 = vunpack.i.h.bf16 %v3864_v61  ;;  %v3865_v62 = vunpack.i.l.bf16 %v3864_v61  ;;  %v3861_v1 = vunpack.i.h.bf16 %v3859_v35  ;;  %v3860_v2 = vunpack.i.l.bf16 %v3859_v35 }
0x12cc   :  { %v3709_v3 = vpack.c.bf16 %v3861_v1, %v3860_v2  ;;  %v3719_v41 = vpack.c.bf16 %v3866_v33, %v3865_v62 }
0x12cd   :  { %v1750_v63 = vpop.permute.xlu1 %1749 }
0x12ce   :  { %3711 = vmatprep.subr.msk.bf16.mxu1 %vm4192_vm2, %v3709_v3 }
0x12cf   :  { %3714 = vmatpush3.bf16.xpose.msk.msra.mxu1 %vm4192_vm2, %v3709_v3 }
0x12d0   :  { %3721 = vmatprep.subr.msk.bf16.mxu1 %vm4192_vm2, %v3719_v41 }
0x12d1   :  { %v1752_v4 = vpop.permute.xlu1 %1751 }
0x12d6   :  { %3496 = vmatmul.mubr.msk.f32.vlgmr.msra.gmra.mrb[14].mxu1 %vm221_vm1, %v4438_v55 }
0x12d7   :  { %3724 = vmatpush3.bf16.xpose.msk.msra.mxu1 %vm4192_vm2, %v3719_v41  ;;  %3509 = vmatprep.mubr.msk.f32.mxu1 %vm221_vm1, %v1750_v63 }
0x12de   :  { %3510 = vmatmul.mubr.msk.f32.vlgmr.msra.gmra.mrb[16].mxu1 %vm221_vm1, %v1752_v4 }
0x13a9   :  { %v3497_v5 = vpop.f32.mrb[14].mxu1 }
0x13aa   :  { %v1637_v6 = vmul.f32 0.35355338, %v3497_v5  ;;  %v1627_v7 = vpop.f32.mrb[15].mxu1 }
0x13ab   :  { %v1636_v8 = vmul.f32 0.35355338, %v1627_v7 }
0x13ac   :  { %v1639_v9 = vadd.f32 %v1637_v6, %v4210_v52 }
0x13ad   :  { %v1638_v11 = vadd.f32 %v1636_v8, %v4205_v49 }
0x13ae   :  { %v1643_v0 = vsel %vm309_vm3, %v1639_v9, -inf }
0x13af   :  { %1644 = vmax.xlane.f32.xlu1 %v1643_v0  ;;  %v1640_v13 = vsel %vm309_vm3, %v1638_v11, -inf }
0x13b0   :  { %1641 = vmax.xlane.f32.xlu0 %v1640_v13 }
0x13b1   :  { %v3511_v14 = vpop.f32.mrb[16].mxu1 }
0x13b2   :  { %v1831_v17 = vpop.f32.mrb[17].mxu1  ;;  %v1841_v18 = vmul.f32 0.35355338, %v3511_v14 }
0x13b3   :  { %v1840_v22 = vmul.f32 0.35355338, %v1831_v17 }
0x13b4   :  { %v1843_v23 = vadd.f32 %v1841_v18, %v4210_v52 }
0x13b5   :  { %v1842_v40 = vadd.f32 %v1840_v22, %v4205_v49 }
0x13b6   :  { %v1847_v21 = vsel %vm309_vm3, %v1843_v23, -inf }
0x13b7   :  { %v1844_v24 = vsel %vm309_vm3, %v1842_v40, -inf }
0x13b8   :  { %1845 = vmax.xlane.f32.xlu0 %v1844_v24 }
0x13bc   :  { %1848 = vmax.xlane.f32.xlu0 %v1847_v21 }
0x143c   :  { %v1645_v38 = vpop.xlane.xlu1 %1644 }
0x143d   :  { %v1647_v25 = vsub.f32 %v1639_v9, %v1645_v38  ;;  %v1642_v26 = vpop.xlane.xlu0 %1641 }
0x143e   :  { %v1646_v27 = vsub.f32 %v1638_v11, %v1642_v26 }
0x143f   :  { %v1650_v28 = vmul.f32 1.442695, %v1647_v25 }
0x1440   :  { %v1648_v29 = vmul.f32 1.442695, %v1646_v27 }
0x1441   :  { %3945 = vpow2.f32 %v1650_v28  ;;  %v3993_v28 = vld [vmem:[%s4850_s0 + $0x8] sm:$0xff] }
0x1442   :  { %3947 = vpow2.f32 %v1648_v29 }
0x1445   :  { %v1846_v30 = vpop.xlane.xlu0 %1845 }
0x1446   :  { %v1850_v31 = vsub.f32 %v1842_v40, %v1846_v30  ;;  %v3994_v30 = vld [vmem:[%s4850_s0] sm:$0xff]  ;;  %s4862_s0 = smov 72  }
0x1448   :  { %v1852_v32 = vmul.f32 1.442695, %v1850_v31 }
0x1449   :  { %v1849_v49 = vpop.xlane.xlu0 %1848 }
0x144a   :  { %3949 = vpow2.f32 %v1852_v32  ;;  %v1851_v37 = vsub.f32 %v1843_v23, %v1849_v49 }
0x144b   :  { %v3946_v20 = vpop.eup %3945 }
0x144c   :  { %v3948_v52 = vpop.eup %3947  ;;  %v1854_v39 = vmul.f32 1.442695, %v1851_v37  ;;  %v1655_v42 = vsel %vm309_vm3, %v3946_v20, 0.0 }
0x144d   :  { %1656 = vadd.xlane.f32.xlu1 %v1655_v42  ;;  %v1652_v19 = vsel %vm309_vm3, %v3948_v52, 0.0 }
0x144e   :  { %3951 = vpow2.f32 %v1854_v39  ;;  %1653 = vadd.xlane.f32.xlu0 %v1652_v19 }
0x1454   :  { %v3950_v43 = vpop.eup %3949 }
0x1455   :  { %v1856_v44 = vsel %vm309_vm3, %v3950_v43, 0.0 }
0x1456   :  { %1857 = vadd.xlane.f32.xlu0 %v1856_v44 }
0x1458   :  { %v3952_v46 = vpop.eup %3951 }
0x1459   :  { %v1859_v47 = vsel %vm309_vm3, %v3952_v46, 0.0 }
0x145a   :  { %1860 = vadd.xlane.f32.xlu1 %v1859_v47 }
0x146b   :  { %3873 = vrot.lane.b32.xlu1 %v4446_v58, %s4856_s26  ;;  %s4864_s26 = smov 8  }
0x146c   :  { %3868 = vrot.lane.b32.xlu0 %v4446_v58, %s4857_s27 }
0x146f   :  { %3878 = vrot.lane.b32.xlu1 %v4446_v58, %s4858_s7 }
0x1470   :  { %1955 = vrot.lane.b32.xlu0 %v4438_v55, %s4859_s5 }
0x1473   :  { %1953 = vrot.lane.b32.xlu1 %v4440_v57, %s4859_s5 }
0x14da   :  { %v1657_v53 = vpop.xlane.xlu1 %1656 }
0x14db   :  { %v1654_v48 = vpop.xlane.xlu0 %1653 }
0x14dc   :  { %3953 = vrcp.f32 %v1654_v48 }
0x14dd   :  { %3955 = vrcp.f32 %v1657_v53 }
0x14e3   :  { %v1858_v54 = vpop.xlane.xlu0 %1857 }
0x14e4   :  { %3957 = vrcp.f32 %v1858_v54 }
0x14e6   :  { %v3954_v56 = vpop.eup %3953 }
0x14e7   :  { %v1861_v61 = vpop.xlane.xlu1 %1860  ;;  %v3869_v35 = vpop.permute.xlu0 %3868  ;;  %v4490_v33 = vmul.f32 %v3954_v56, %v3948_v52 }
0x14e8   :  { %3959 = vrcp.f32 %v1861_v61  ;;  %v3871_v62 = vunpack.i.h.bf16 %v3869_v35  ;;  %v3870_v1 = vunpack.i.l.bf16 %v3869_v35  ;;  %v3956_v3 = vpop.eup %3955 }
0x14e9   :  { %3502 = vmatprep.mubr.msk.f32.mxu0 %vm309_vm3, %v4490_v33  ;;  %v4494_v6 = vmul.f32 %v3956_v3, %v3946_v20 }
0x14ea   :  { %v3715_v2 = vpack.c.bf16 %v3871_v62, %v3870_v1 }
0x14eb   :  { %v3874_v41 = vpop.permute.xlu1 %3873  ;;  %v1956_v22 = vpop.permute.xlu0 %1955 }
0x14ec   :  { %v3876_v63 = vunpack.i.h.bf16 %v3874_v41  ;;  %v3875_v4 = vunpack.i.l.bf16 %v3874_v41  ;;  %3716 = vmatprep.subr.bf16.mxu0 %v3715_v2 }
0x14ed   :  { %3718 = vmatpush3.bf16.msra.mxu0 %v3715_v2 }
0x14ee   :  { %v3958_v5 = vpop.eup %3957  ;;  %v3725_v7 = vpack.c.bf16 %v3876_v63, %v3875_v4 }
0x14ef   :  { %v3879_v8 = vpop.permute.xlu1 %3878  ;;  %v4496_v9 = vmul.f32 %v3958_v5, %v3950_v43 }
0x14f0   :  { %v3881_v11 = vunpack.i.h.bf16 %v3879_v8  ;;  %v3880_v0 = vunpack.i.l.bf16 %v3879_v8  ;;  %3503 = vmatmul.mubr.msk.f32.vlgmr.msra.gmra.mrb[12].mxu0 %vm309_vm3, %v4494_v6  ;;  %3726 = vmatprep.subr.bf16.mxu0 %v3725_v7 }
0x14f1   :  { %3728 = vmatpush3.bf16.msra.mxu0 %v3725_v7  ;;  %3516 = vmatprep.mubr.msk.f32.mxu0 %vm309_vm3, %v4496_v9 }
0x14f2   :  { %v3960_v13 = vpop.eup %3959  ;;  %v3729_v14 = vpack.c.bf16 %v3881_v11, %v3880_v0 }
0x14f3   :  { %v4502_v17 = vmul.f32 %v3960_v13, %v3952_v46  ;;  %v1954_v18 = vpop.permute.xlu1 %1953 }
0x14f4   :  { %3731 = vmatprep.subr.msk.bf16.mxu0 %vm4192_vm2, %v3729_v14 }
0x14f5   :  { %3517 = vmatmul.mubr.msk.f32.vlgmr.msra.gmra.mrb[14].mxu0 %vm309_vm3, %v4502_v17 }
0x14f6   :  { %3523 = vmatprep.mubr.msk.f32.mxu0 %vm221_vm1, %v1954_v18 }
0x14fa   :  { %3734 = vmatpush3.bf16.xpose.msk.msra.mxu0 %vm4192_vm2, %v3729_v14 }
0x1501   :  { %3524 = vmatmul.mubr.msk.f32.vlgmr.msra.gmra.mrb[16].mxu0 %vm221_vm1, %v1956_v22 }
0x15c3   :  { %v4512_v40 = vpop.f32.mrb[12].mxu0 }
0x15c4   :  { %v4514_v24 = vpop.f32.mrb[13].mxu0 }
0x15c8   :  { %v4516_v23 = vpop.f32.mrb[14].mxu0 }
0x15c9   :  { %v4518_v21 = vpop.f32.mrb[15].mxu0 }
0x15d4   :  { %v3525_v38 = vpop.f32.mrb[16].mxu0 }
0x15d5   :  { %v2045_v25 = vmul.f32 0.35355338, %v3525_v38  ;;  %v2035_v26 = vpop.f32.mrb[17].mxu0 }
0x15d6   :  { %v2044_v27 = vmul.f32 0.35355338, %v2035_v26 }
0x15d7   :  { %v2047_v29 = vadd.f32 %v3993_v28, %v2045_v25 }
0x15d8   :  { %v2046_v31 = vadd.f32 %v3994_v30, %v2044_v27 }
0x15d9   :  { %v2051_v32 = vsel %vm309_vm3, %v2047_v29, -inf }
0x15da   :  { %2052 = vmax.xlane.f32.xlu0 %v2051_v32  ;;  %v2048_v49 = vsel %vm309_vm3, %v2046_v31, -inf }
0x15db   :  { %2049 = vmax.xlane.f32.xlu1 %v2048_v49 }
0x15ec   :  { %3883 = vrot.lane.b32.xlu1 %v4446_v58, %s4860_s24 }
0x15f0   :  { %2157 = vrot.lane.b32.xlu1 %v4440_v57, %s4861_s25 }
0x15f4   :  { %2159 = vrot.lane.b32.xlu1 %v4438_v55, %s4861_s25 }
0x1667   :  { %v2053_v37 = vpop.xlane.xlu0 %2052 }
0x1668   :  { %v2055_v20 = vsub.f32 %v2047_v29, %v2053_v37  ;;  %v2050_v52 = vpop.xlane.xlu1 %2049 }
0x1669   :  { %v2054_v39 = vsub.f32 %v2046_v31, %v2050_v52 }
0x166a   :  { %v2058_v42 = vmul.f32 1.442695, %v2055_v20 }
0x166b   :  { %v2056_v19 = vmul.f32 1.442695, %v2054_v39 }
0x166c   :  { %3961 = vpow2.f32 %v2058_v42  ;;  %v3884_v43 = vpop.permute.xlu1 %3883 }
0x166d   :  { %v3886_v44 = vunpack.i.h.bf16 %v3884_v43  ;;  %v3885_v46 = vunpack.i.l.bf16 %v3884_v43  ;;  %3963 = vpow2.f32 %v2056_v19 }
0x166f   :  { %v3735_v47 = vpack.c.bf16 %v3886_v44, %v3885_v46 }
0x1670   :  { %v2158_v4 = vpop.permute.xlu1 %2157 }
0x1671   :  { %3736 = vmatprep.subr.bf16.mxu1 %v3735_v47 }
0x1672   :  { %3738 = vmatpush3.bf16.msra.mxu1 %v3735_v47  ;;  %v3196_v47 = vld [vmem:[%s4851_s29 + $0x28] sm:$0xff] }
0x1674   :  { %v2160_v5 = vpop.permute.xlu1 %2159 }
0x1676   :  { %v3962_v48 = vpop.eup %3961 }
0x1677   :  { %v2063_v57 = vsel %vm309_vm3, %v3962_v48, 0.0  ;;  %v3964_v53 = vpop.eup %3963 }
0x1678   :  { %2064 = vadd.xlane.f32.xlu0 %v2063_v57  ;;  %v2060_v55 = vsel %vm309_vm3, %v3964_v53, 0.0 }
0x167c   :  { %2061 = vadd.xlane.f32.xlu0 %v2060_v55 }
0x1692   :  { %3888 = vrot.lane.b32.xlu0 %v4446_v58, %s4862_s0 }
0x1705   :  { %v2065_v54 = vpop.xlane.xlu0 %2064 }
0x1706   :  { %3965 = vrcp.f32 %v2065_v54 }
0x1709   :  { %v2062_v56 = vpop.xlane.xlu0 %2061 }
0x170a   :  { %3967 = vrcp.f32 %v2062_v56 }
0x170d   :  { %v3889_v61 = vpop.permute.xlu0 %3888 }
0x170e   :  { %v3891_v35 = vunpack.i.h.bf16 %v3889_v61  ;;  %v3890_v62 = vunpack.i.l.bf16 %v3889_v61 }
0x1710   :  { %v3739_v1 = vpack.c.bf16 %v3891_v35, %v3890_v62  ;;  %v3966_v2 = vpop.eup %3965 }
0x1711   :  { %v4542_v63 = vmul.f32 %v3966_v2, %v3962_v48  ;;  %v3197_v48 = vld [vmem:[%s4851_s29 + $0x30] sm:$0xff] }
0x1712   :  { %3741 = vmatprep.subr.msk.bf16.mxu1 %vm4192_vm2, %v3739_v1 }
0x1714   :  { %v3968_v3 = vpop.eup %3967 }
0x1715   :  { %v4540_v41 = vmul.f32 %v3968_v3, %v3964_v53  ;;  %v3198_v53 = vld [vmem:[%s4851_s29 + $0x38] sm:$0xff] }
0x1716   :  { %v3753_v55 = vpack.c.bf16 %v3198_v53, %v3197_v48  ;;  %v3205_v53 = vld [vmem:[%s4789_s8 + $0x1] ss:$0 sm:$0xff] }
0x1717   :  { %3530 = vmatprep.mubr.msk.f32.mxu1 %vm309_vm3, %v4540_v41 }
0x1718   :  { %3531 = vmatmul.mubr.msk.f32.vlgmr.msra.gmra.mrb[18].mxu1 %vm309_vm3, %v4542_v63 }
0x1719   :  { %3744 = vmatpush3.bf16.xpose.msk.msra.mxu1 %vm4192_vm2, %v3739_v1  ;;  %3537 = vmatprep.mubr.msk.f32.mxu1 %vm221_vm1, %v2158_v4 }
0x1720   :  { %3538 = vmatmul.mubr.msk.f32.vlgmr.msra.gmra.mrb[20].mxu1 %vm221_vm1, %v2160_v5 }
0x17eb   :  { %v3532_v7 = vpop.f32.mrb[18].mxu1 }
0x17ec   :  { %v2148_v8 = vpop.f32.mrb[19].mxu1 }
0x17f3   :  { %v3539_v11 = vpop.f32.mrb[20].mxu1 }
0x17f4   :  { %v2249_v0 = vmul.f32 0.35355338, %v3539_v11  ;;  %v2239_v13 = vpop.f32.mrb[21].mxu1 }
0x17f5   :  { %v2248_v14 = vmul.f32 0.35355338, %v2239_v13 }
0x17f6   :  { %v2251_v18 = vadd.f32 %v3993_v28, %v2249_v0 }
0x17f7   :  { %v2250_v22 = vadd.f32 %v3994_v30, %v2248_v14 }
0x17f8   :  { %v2255_v38 = vsel %vm309_vm3, %v2251_v18, -inf }
0x17f9   :  { %2256 = vmax.xlane.f32.xlu0 %v2255_v38  ;;  %v2252_v25 = vsel %vm309_vm3, %v2250_v22, -inf }
0x17fa   :  { %2253 = vmax.xlane.f32.xlu1 %v2252_v25 }
0x180b   :  { %3893 = vrot.lane.b32.xlu1 %v4446_v58, %s4863_s6 }
0x180f   :  { %2365 = vrot.lane.b32.xlu1 %v4516_v23, %s4864_s26 }
0x1813   :  { %2371 = vrot.lane.b32.xlu1 %v2148_v8, %s4865_s28 }
0x1817   :  { %2373 = vrot.lane.b32.xlu1 %v3532_v7, %s4865_s28 }
0x1886   :  { %v2257_v45 = vpop.xlane.xlu0 %2256 }
0x1887   :  { %v2259_v26 = vsub.f32 %v2251_v18, %v2257_v45  ;;  %v2254_v27 = vpop.xlane.xlu1 %2253 }
0x1888   :  { %v2258_v28 = vsub.f32 %v2250_v22, %v2254_v27 }
0x1889   :  { %v2262_v29 = vmul.f32 1.442695, %v2259_v26 }
0x188a   :  { %v2260_v30 = vmul.f32 1.442695, %v2258_v28 }
0x188b   :  { %v3894_v31 = vpop.permute.xlu1 %3893 }
0x188c   :  { %3969 = vpow2.f32 %v2260_v30  ;;  %v3896_v32 = vunpack.i.h.bf16 %v3894_v31  ;;  %v3895_v49 = vunpack.i.l.bf16 %v3894_v31 }
0x188d   :  { %3971 = vpow2.f32 %v2262_v29 }
0x188e   :  { %v3745_v37 = vpack.c.bf16 %v3896_v32, %v3895_v49 }
0x188f   :  { %v2366_v61 = vpop.permute.xlu1 %2365 }
0x1890   :  { %3746 = vmatprep.subr.bf16.mxu0 %v3745_v37  ;;  %v2386_v4 = vsel %vm221_vm1, %v4512_v40, %v2366_v61 }
0x1891   :  { %3748 = vmatpush3.bf16.msra.mxu0 %v3745_v37 }
0x1893   :  { %v2372_v35 = vpop.permute.xlu1 %2371 }
0x1896   :  { %v3970_v58 = vpop.eup %3969 }
0x1897   :  { %v2264_v23 = vsel %vm309_vm3, %v3970_v58, 0.0  ;;  %v3972_v20 = vpop.eup %3971  ;;  %v2374_v1 = vpop.permute.xlu1 %2373 }
0x1898   :  { %2265 = vadd.xlane.f32.xlu0 %v2264_v23  ;;  %v2267_v52 = vsel %vm309_vm3, %v3972_v20, 0.0  ;;  %v2388_v8 = vsel %vm309_vm3, %v2386_v4, %v2374_v1  ;;  %v3216_v4 = vld [vmem:[%s4791_s12 + $0x48] sm:$0xff] }
0x189c   :  { %2268 = vadd.xlane.f32.xlu0 %v2267_v52  ;;  %v3210_v52 = vld [vmem:[%s4788_s10 + $0x38] sm:$0xff] }
0x18b2   :  { %2363 = vrot.lane.b32.xlu0 %v4518_v21, %s4864_s26  ;;  %v3195_v21 = vld [vmem:[%s4851_s29 + $0x20] sm:$0xff] }
0x18b3   :  { %v3749_v57 = vpack.c.bf16 %v3196_v47, %v3195_v21 }
0x18b5   :  { %3750 = vmatprep.subr.bf16.mxu0 %v3749_v57 }
0x1925   :  { %v2266_v39 = vpop.xlane.xlu0 %2265 }
0x1926   :  { %3973 = vrcp.f32 %v2266_v39 }
0x1929   :  { %v2269_v42 = vpop.xlane.xlu0 %2268 }
0x192a   :  { %3975 = vrcp.f32 %v2269_v42 }
0x192d   :  { %v2364_v62 = vpop.permute.xlu0 %2363 }
0x192e   :  { %v2385_v2 = vsel %vm221_vm1, %v4514_v24, %v2364_v62  ;;  %v3200_v24 = vld [vmem:[%s4852_s1 + $0x1] ss:$0 sm:$0xff] }
0x192f   :  { %v2387_v5 = vsel %vm309_vm3, %v2385_v2, %v2372_v35 }
0x1930   :  { %v3974_v19 = vpop.eup %3973 }
0x1931   :  { %v4564_v43 = vmul.f32 %v3974_v19, %v3970_v58  ;;  %v3208_v58 = vld [vmem:[%s4788_s10 + $0x28] sm:$0xff] }
0x1933   :  { %3544 = vmatprep.mubr.msk.f32.mxu0 %vm309_vm3, %v4564_v43 }
0x1934   :  { %v3976_v44 = vpop.eup %3975 }
0x1935   :  { %v4568_v46 = vmul.f32 %v3976_v44, %v3972_v20  ;;  %v3209_v20 = vld [vmem:[%s4788_s10 + $0x30] sm:$0xff] }
0x1936   :  { %v3761_v39 = vpack.c.bf16 %v3210_v52, %v3209_v20 }
0x1937   :  { %3545 = vmatmul.mubr.msk.f32.vlgmr.msra.gmra.mrb[18].mxu0 %vm309_vm3, %v4568_v46 }
0x1938   :  { %3752 = vmatpush3.bf16.msra.mxu0 %v3749_v57 }
0x1939   :  { %3754 = vmatprep.subr.bf16.mxu0 %v3753_v55 }
0x193c   :  { %3756 = vmatpush3.bf16.msra.mxu0 %v3753_v55 }
0x1a0a   :  { %v3546_v54 = vpop.f32.mrb[18].mxu0 }
0x1a0b   :  { %2381 = vrot.lane.b32.xlu1 %v3546_v54, %s4866_s2  ;;  %v2352_v56 = vpop.f32.mrb[19].mxu0  ;;  %v3206_v54 = vld [vmem:[%s4790_s9 + $0x1] ss:$0 sm:$0xff] }
0x1a0c   :  { %2379 = vrot.lane.b32.xlu0 %v2352_v56, %s4866_s2 }
0x1a7d   :  { %v2382_v3 = vpop.permute.xlu1 %2381 }
0x1a7e   :  { %v2380_v7 = vpop.permute.xlu0 %2379  ;;  %v2390_v0 = vsel %vm1059_vm4, %v2388_v8, %v2382_v3  ;;  %v3215_v3 = vld [vmem:[%s4791_s12 + $0x40] sm:$0xff]  ;;  %v3218_v8 = vld [vmem:[%s4791_s12 + $0x58] sm:$0xff] }
0x1a7f   :  { %v2389_v11 = vsel %vm1059_vm4, %v2387_v5, %v2380_v7  ;;  %v3765_v5 = vpack.c.bf16 %v3216_v4, %v3215_v3  ;;  %v3217_v7 = vld [vmem:[%s4791_s12 + $0x50] sm:$0xff] }
0x1a80   :  { %3555 = vmatprep.mubr.msk.f32.mxu0 %vm79_vm0, %v2389_v11  ;;  %v3219_v11 = vld [vmem:[%s4791_s12 + $0x60] sm:$0xff] }
0x1a81   :  { %3556 = vmatmul.mubr.msk.f32.vlgmr.msra.gmra.mrb[20].mxu0 %vm79_vm0, %v2390_v0  ;;  %3766 = vmatprep.subr.bf16.mxu0 %v3765_v5  ;;  %v3769_v0 = vpack.c.bf16 %v3218_v8, %v3217_v7 }
0x1a82   :  { %3768 = vmatpush3.bf16.msra.mxu0 %v3765_v5 }
0x1a83   :  { %3770 = vmatprep.subr.bf16.mxu0 %v3769_v0 }
0x1a86   :  { %3772 = vmatpush3.bf16.msra.mxu0 %v3769_v0  ;;  %v2858_v0 = vld [vmem:[%s4796_s16] sm:$0xff] }
0x1b54   :  { %v3557_v13 = vpop.f32.mrb[20].mxu0 }
0x1b55   :  { %v2482_v14 = vadd.f32 %v3557_v13, %v3200_v24  ;;  %v2476_v40 = vpop.f32.mrb[21].mxu0 }
0x1b56   :  { %v2477_v18 = vadd.f32 %v3200_v24, %v2476_v40  ;;  %v3220_v24 = vld [vmem:[%s4791_s12 + $0x68] sm:$0xff]  ;;  %v3222_v40 = vld [vmem:[%s4791_s12 + $0x78] sm:$0xff] }
0x1b57   :  { %v2486_v22 = vadd.f32 %v2482_v14, %v4429_v51  ;;  %v3773_v13 = vpack.c.bf16 %v3220_v24, %v3219_v11  ;;  %v3221_v14 = vld [vmem:[%s4791_s12 + $0x70] sm:$0xff]  ;;  %v2859_v24 = vld [vmem:[%s4796_s16 + $0x8] sm:$0xff] }
0x1b58   :  { %v2485_v38 = vadd.f32 %v2477_v18, %v4427_v50  ;;  %v3207_v50 = vld [vmem:[%s4788_s10 + $0x20] sm:$0xff]  ;;  %v3777_v18 = vpack.c.bf16 %v3222_v40, %v3221_v14 }
0x1b59   :  { %v2494_v25 = vsel %vm79_vm0, %v2486_v22, 0.0  ;;  %v3757_v23 = vpack.c.bf16 %v3208_v58, %v3207_v50  ;;  %3774 = vmatprep.subr.bf16.mxu0 %v3773_v13 }
0x1b5a   :  { %2495 = vadd.xlane.f32.xlu1 %v2494_v25  ;;  %v2491_v45 = vsel %vm79_vm0, %v2485_v38, 0.0  ;;  %3776 = vmatpush3.bf16.msra.mxu0 %v3773_v13 }
0x1b5b   :  { %2492 = vadd.xlane.f32.xlu0 %v2491_v45  ;;  %3758 = vmatprep.subr.bf16.mxu1 %v3757_v23 }
0x1b5c   :  { %3760 = vmatpush3.bf16.msra.mxu1 %v3757_v23  ;;  %3778 = vmatprep.subr.bf16.mxu0 %v3777_v18 }
0x1b5d   :  { %3762 = vmatprep.subr.bf16.mxu1 %v3761_v39 }
0x1b5e   :  { %3780 = vmatpush3.bf16.msra.mxu0 %v3777_v18 }
0x1b60   :  { %3764 = vmatpush3.bf16.msra.mxu1 %v3761_v39 }
0x1be7   :  { %v2496_v26 = vpop.xlane.xlu1 %2495 }
0x1be8   :  { %v2498_v27 = vmul.f32 0.03125, %v2496_v26  ;;  %v2493_v28 = vpop.xlane.xlu0 %2492 }
0x1be9   :  { %v2497_v29 = vmul.f32 0.03125, %v2493_v28 }
0x1bea   :  { %v2500_v30 = vsub.f32 %v2486_v22, %v2498_v27  ;;  %v3212_v22 = vld [vmem:[%s4792_s11 + $0x1] ss:$0 sm:$0xff] }
0x1beb   :  { %v2499_v31 = vsub.f32 %v2485_v38, %v2497_v29 }
0x1bec   :  { %v2502_v37 = vmul.f32 %v2500_v30, %v2500_v30 }
0x1bed   :  { %v2501_v32 = vmul.f32 %v2499_v31, %v2499_v31 }
0x1bee   :  { %v2506_v51 = vsel %vm79_vm0, %v2502_v37, 0.0 }
0x1bef   :  { %v2503_v49 = vsel %vm79_vm0, %v2501_v32, 0.0 }
0x1bf0   :  { %2504 = vadd.xlane.f32.xlu0 %v2503_v49 }
0x1bf4   :  { %2507 = vadd.xlane.f32.xlu0 %v2506_v51 }
0x1c7d   :  { %v2505_v42 = vpop.xlane.xlu0 %2504 }
0x1c7e   :  { %v2509_v19 = vmul.f32 0.03125, %v2505_v42 }
0x1c80   :  { %v2511_v44 = vadd.f32 1e-12, %v2509_v19 }
0x1c81   :  { %v2508_v21 = vpop.xlane.xlu0 %2507 }
0x1c82   :  { %3977 = vrsqrt.f32 %v2511_v44  ;;  %v2510_v47 = vmul.f32 0.03125, %v2508_v21  ;;  %v3224_v21 = vld [vmem:[%s4793_s13 + $0x1] ss:$0 sm:$0xff]  ;;  %s4009_s13 = smov 32  }
0x1c84   :  { %v2512_v48 = vadd.f32 1e-12, %v2510_v47 }
0x1c86   :  { %3979 = vrsqrt.f32 %v2512_v48 }
0x1c8c   :  { %v3978_v57 = vpop.eup %3977 }
0x1c8d   :  { %v2515_v55 = vmul.f32 %v3978_v57, %v2499_v31 }
0x1c8f   :  { %v2523_v56 = vmul.f32 %v3205_v53, %v2515_v55 }
0x1c90   :  { %v3980_v61 = vpop.eup %3979 }
0x1c91   :  { %v2516_v35 = vmul.f32 %v3980_v61, %v2500_v30  ;;  %v2531_v62 = vadd.f32 %v3206_v54, %v2523_v56 }
0x1c93   :  { %v2524_v1 = vmul.f32 %v3205_v53, %v2516_v35  ;;  %3566 = vmatprep.mubr.msk.f32.mxu1 %vm79_vm0, %v2531_v62 }
0x1c95   :  { %v2532_v2 = vadd.f32 %v3206_v54, %v2524_v1 }
0x1c97   :  { %3567 = vmatmul.mubr.msk.f32.vlgmr.msra.gmra.mrb[22].mxu1 %vm79_vm0, %v2532_v2 }
0x1d6a   :  { %v3568_v38 = vpop.f32.mrb[22].mxu1 }
0x1d6b   :  { %v2624_v25 = vadd.f32 %v3568_v38, %v3212_v22  ;;  %v2618_v45 = vpop.f32.mrb[23].mxu1 }
0x1d6c   :  { %v2619_v26 = vadd.f32 %v3212_v22, %v2618_v45 }
0x1d6d   :  { %v2630_v27 = vmul.f32 0.044715, %v2624_v25  ;;  %v2628_v42 = vmul.f32 0.5, %v2624_v25 }
0x1d6e   :  { %v2629_v28 = vmul.f32 0.044715, %v2619_v26  ;;  %v2627_v52 = vmul.f32 0.5, %v2619_v26 }
0x1d6f   :  { %v2632_v29 = vmul.f32 %v2630_v27, %v2624_v25 }
0x1d70   :  { %v2631_v30 = vmul.f32 %v2629_v28, %v2619_v26 }
0x1d71   :  { %v2634_v31 = vmul.f32 %v2632_v29, %v2624_v25  ;;  %v3230_v29 = vld [vmem:[%s4795_s15 + $0x1] ss:$0 sm:$0xff] }
0x1d72   :  { %v2633_v32 = vmul.f32 %v2631_v30, %v2619_v26 }
0x1d73   :  { %v2636_v49 = vadd.f32 %v2634_v31, %v2624_v25 }
0x1d74   :  { %v2635_v37 = vadd.f32 %v2633_v32, %v2619_v26 }
0x1d75   :  { %v2638_v51 = vmul.f32 0.7978846, %v2636_v49 }
0x1d76   :  { %v2637_v50 = vmul.f32 0.7978846, %v2635_v37 }
0x1d77   :  { %3981 = vtanh.f32 %v2638_v51 }
0x1d78   :  { %3983 = vtanh.f32 %v2637_v50 }
0x1d81   :  { %v3982_v58 = vpop.eup %3981 }
0x1d82   :  { %v3984_v23 = vpop.eup %3983  ;;  %v2642_v20 = vadd.f32 1.0, %v3982_v58 }
0x1d83   :  { %v2641_v39 = vadd.f32 1.0, %v3984_v23 }
0x1d84   :  { %v2644_v44 = vmul.f32 %v2642_v20, %v2628_v42 }
0x1d85   :  { %v2643_v19 = vmul.f32 %v2641_v39, %v2627_v52 }
0x1d87   :  { %3585 = vmatprep.mubr.msk.f32.mxu0 %vm1325_vm5, %v2643_v19 }
0x1d88   :  { %3586 = vmatmul.mubr.msk.f32.vlgmr.msra.gmra.mrb[22].mxu0 %vm1325_vm5, %v2644_v44 }
0x1e5b   :  { %v3587_v47 = vpop.f32.mrb[22].mxu0 }
0x1e5c   :  { %v2740_v48 = vadd.f32 %v3587_v47, %v3224_v21  ;;  %v2734_v57 = vpop.f32.mrb[23].mxu0 }
0x1e5d   :  { %v2735_v53 = vadd.f32 %v3224_v21, %v2734_v57 }
0x1e5e   :  { %v2744_v55 = vadd.f32 %v2740_v48, %v2532_v2 }
0x1e5f   :  { %v2743_v54 = vadd.f32 %v2735_v53, %v2531_v62 }
0x1e60   :  { %v2752_v56 = vsel %vm79_vm0, %v2744_v55, 0.0 }
0x1e61   :  { %2753 = vadd.xlane.f32.xlu0 %v2752_v56  ;;  %v2749_v61 = vsel %vm79_vm0, %v2743_v54, 0.0 }
0x1e62   :  { %2750 = vadd.xlane.f32.xlu1 %v2749_v61 }
0x1eee   :  { %v2754_v35 = vpop.xlane.xlu0 %2753 }
0x1eef   :  { %v2756_v1 = vmul.f32 0.03125, %v2754_v35  ;;  %v2751_v3 = vpop.xlane.xlu1 %2750 }
0x1ef0   :  { %v2755_v4 = vmul.f32 0.03125, %v2751_v3  ;;  %v2945_v3 = vld [vmem:[%s4798_s18 + $0x10] sm:$0xff] }
0x1ef1   :  { %v2758_v5 = vsub.f32 %v2744_v55, %v2756_v1  ;;  %v2944_v1 = vld [vmem:[%s4798_s18 + $0x8] sm:$0xff] }
0x1ef2   :  { %v4659_v7 = vsub.f32 %v2743_v54, %v2755_v4 }
0x1ef3   :  { %v2760_v8 = vmul.f32 %v2758_v5, %v2758_v5 }
0x1ef4   :  { %v2759_v11 = vmul.f32 %v4659_v7, %v4659_v7 }
0x1ef5   :  { %v2764_v2 = vsel %vm79_vm0, %v2760_v8, 0.0  ;;  %v3231_v8 = vld [vmem:[%s4799_s17] ss:$0 sm:$0xff] }
0x1ef6   :  { %2765 = vadd.xlane.f32.xlu0 %v2764_v2  ;;  %v2761_v62 = vsel %vm79_vm0, %v2759_v11, 0.0 }
0x1ef7   :  { %2762 = vadd.xlane.f32.xlu1 %v2761_v62 }
0x1f08   :  { %2793 = vrot.lane.b32.xlu1 %v4256_v60, %s4865_s28  ;;  %v3782_v60 = vpack.c.bf16 %v2859_v24, %v2858_v0  ;;  %v3028_v24 = vld [vmem:[%s4800_s20] sm:$0xff] }
0x1f0c   :  { %2791 = vrot.lane.b32.xlu0 %v4254_v59, %s4865_s28  ;;  %2797 = vrot.lane.b32.xlu1 %v4286_v34, %s4009_s13  ;;  %v4010_v59 = vmov 0.0|0.0   ;;  %v2860_v34 = vld [vmem:[%s4796_s16 + $0x10] sm:$0xff] }
0x1f0d   :  { %3781 = vmatprep.subr.bf16.mxu1 %v4010_v59  ;;  %3793 = vmatprep.subr.bf16.mxu0 %v4010_v59 }
0x1f0e   :  { %3783 = vmatpush3.bf16.msra.mxu1 %v3782_v60  ;;  %v3029_v60 = vld [vmem:[%s4800_s20 + $0x8] sm:$0xff] }
0x1f0f   :  { %3784 = vmatprep.subr.bf16.mxu1 %v4010_v59 }
0x1f10   :  { %2803 = vrot.lane.b32.xlu0 %v4312_v10, %s4860_s24  ;;  %2799 = vrot.lane.b32.xlu1 %v4288_v36, %s4009_s13  ;;  %v2861_v36 = vld [vmem:[%s4796_s16 + $0x18] sm:$0xff] }
0x1f11   :  { %v3785_v10 = vpack.c.bf16 %v2861_v36, %v2860_v34  ;;  %v3030_v34 = vld [vmem:[%s4800_s20 + $0x10] sm:$0xff]  ;;  %v3794_v36 = vpack.c.bf16 %v3029_v60, %v3028_v24 }
0x1f13   :  { %3786 = vmatpush3.bf16.msra.mxu1 %v3785_v10  ;;  %v3031_v10 = vld [vmem:[%s4800_s20 + $0x18] sm:$0xff]  ;;  %3795 = vmatpush3.bf16.msra.mxu0 %v3794_v36 }
0x1f14   :  { %2809 = vrot.lane.b32.xlu0 %v4490_v33, %s4857_s27  ;;  %2805 = vrot.lane.b32.xlu1 %v4316_v12, %s4860_s24  ;;  %v4012_v12 = vmov 0.0  }
0x1f15   :  { %3596 = vmatprep.mubr.msk.f32.mxu1 %vm4011_vm6, %v4012_v12  ;;  %3787 = vmatprep.subr.bf16.mxu1 %v4010_v59 }
0x1f16   :  { %3618 = vmatprep.mubr.msk.f32.mxu0 %vm4011_vm6, %v4012_v12  ;;  %3796 = vmatprep.subr.bf16.mxu0 %v4010_v59 }
0x1f18   :  { %2815 = vrot.lane.b32.xlu0 %v4496_v9, %s4858_s7  ;;  %2811 = vrot.lane.b32.xlu1 %v4494_v6, %s4857_s27 }
0x1f1c   :  { %2821 = vrot.lane.b32.xlu0 %v4540_v41, %s4854_s4  ;;  %2817 = vrot.lane.b32.xlu1 %v4502_v17, %s4858_s7  ;;  %s4867_s7 = sld [smem:[#allocation10_spill]] }
0x1f20   :  { %2827 = vrot.lane.b32.xlu0 %v4564_v43, %s4859_s5  ;;  %2823 = vrot.lane.b32.xlu1 %v4542_v63, %s4854_s4  ;;  %v3229_v63 = vld [vmem:[%s4794_s14 + $0x1] ss:$0 sm:$0xff] }
0x1f24   :  { %2829 = vrot.lane.b32.xlu1 %v4568_v46, %s4859_s5 }
0x1f83   :  { %v2766_v33 = vpop.xlane.xlu0 %2765 }
0x1f84   :  { %v2768_v6 = vmul.f32 0.03125, %v2766_v33  ;;  %v2763_v9 = vpop.xlane.xlu1 %2762  ;;  %v3233_v33 = vld [vmem:[%s4801_s19] ss:$0 sm:$0xff] }
0x1f85   :  { %v2767_v13 = vmul.f32 0.03125, %v2763_v9 }
0x1f86   :  { %v2770_v14 = vadd.f32 1e-12, %v2768_v6 }
0x1f87   :  { %v2769_v40 = vadd.f32 1e-12, %v2767_v13  ;;  %v2792_v18 = vpop.permute.xlu0 %2791 }
0x1f88   :  { %3985 = vrsqrt.f32 %v2770_v14  ;;  %v2794_v41 = vpop.permute.xlu1 %2793  ;;  %v2833_v46 = vsel %vm309_vm3, %v4222_v15, %v2792_v18 }
0x1f89   :  { %3987 = vrsqrt.f32 %v2769_v40  ;;  %v2834_v47 = vsel %vm309_vm3, %v4224_v16, %v2794_v41  ;;  %v2943_v16 = vld [vmem:[%s4798_s18] sm:$0xff] }
0x1f8a   :  { %v3788_v4 = vpack.c.bf16 %v2944_v1, %v2943_v16  ;;  %v3235_v40 = vld [vmem:[%s4802_s21] ss:$0 sm:$0xff] }
0x1f8b   :  { %v2804_v17 = vpop.permute.xlu0 %2803 }
0x1f8c   :  { %v2798_v22 = vpop.permute.xlu1 %2797 }
0x1f8d   :  { %v2835_v27 = vsel %vm79_vm0, %v2833_v46, %v2798_v22 }
0x1f8e   :  { %v2838_v49 = vsel %vm2837_vm7, %v2835_v27, %v2804_v17 }
0x1f8f   :  { %v2810_v38 = vpop.permute.xlu0 %2809 }
0x1f90   :  { %v2800_v43 = vpop.permute.xlu1 %2799  ;;  %v2840_v23 = vsel %vm1325_vm5, %v2838_v49, %v2810_v38 }
0x1f91   :  { %v2836_v48 = vsel %vm79_vm0, %v2834_v47, %v2800_v43 }
0x1f92   :  { %v3986_v25 = vpop.eup %3985 }
0x1f93   :  { %v3988_v45 = vpop.eup %3987  ;;  %v2774_v26 = vmul.f32 %v3986_v25, %v2758_v5  ;;  %v2816_v28 = vpop.permute.xlu0 %2815  ;;  %v2946_v5 = vld [vmem:[%s4798_s18 + $0x18] sm:$0xff] }
0x1f94   :  { %v2773_v30 = vmul.f32 %v3988_v45, %v4659_v7  ;;  %v2806_v31 = vpop.permute.xlu1 %2805  ;;  %v2843_v52 = vsel %vm2842_vm8, %v2840_v23, %v2816_v28  ;;  %v3791_v7 = vpack.c.bf16 %v2946_v5, %v2945_v3 }
0x1f95   :  { %v2782_v32 = vmul.f32 %v3229_v63, %v2774_v26  ;;  %v2839_v53 = vsel %vm2837_vm7, %v2836_v48, %v2806_v31 }
0x1f96   :  { %v2781_v37 = vmul.f32 %v3229_v63, %v2773_v30 }
0x1f97   :  { %v2822_v51 = vpop.permute.xlu0 %2821  ;;  %v2790_v15 = vadd.f32 %v3230_v29, %v2782_v32 }
0x1f98   :  { %v2812_v50 = vpop.permute.xlu1 %2811  ;;  %v2789_v58 = vadd.f32 %v3230_v29, %v2781_v37  ;;  %v2846_v39 = vsel %vm2845_vm9, %v2843_v52, %v2822_v51 }
0x1f99   :  { %v2854_v20 = vrot.slane %v2790_v15, 7  ;;  %v2841_v55 = vsel %vm1325_vm5, %v2839_v53, %v2812_v50 }
0x1f9b   :  { %v2828_v42 = vpop.permute.xlu0 %2827  ;;  %v2857_v19 = vsel %vm2856_vm10, %v2789_v58, %v2854_v20 }
0x1f9c   :  { %v2849_v44 = vsel %vm2848_vm11, %v2846_v39, %v2828_v42  ;;  %3597 = vmatmul.mubr.msk.f32.vlgmr.msra.gmra.mrb[24].mxu1 %vm79_vm0, %v2857_v19  ;;  %v2818_v21 = vpop.permute.xlu1 %2817 }
0x1f9d   :  { %2851 = vst [vmem:[%s4797_s23] sm:$0xff] %v2849_v44  ;;  %3607 = vmatprep.mubr.msk.f32.mxu1 %vm4011_vm6, %v4012_v12  ;;  %v2844_v54 = vsel %vm2842_vm8, %v2841_v55, %v2818_v21  ;;  %3789 = vmatpush3.bf16.msra.mxu1 %v3788_v4  ;;  %v3797_v12 = vpack.c.bf16 %v3031_v10, %v3030_v34 }
0x1f9e   :  { %3790 = vmatprep.subr.bf16.mxu1 %v4010_v59 }
0x1f9f   :  { %3798 = vmatpush3.bf16.msra.mxu0 %v3797_v12 }
0x1fa0   :  { %v2824_v57 = vpop.permute.xlu1 %2823 }
0x1fa1   :  { %v2847_v56 = vsel %vm2845_vm9, %v2844_v54, %v2824_v57  ;;  %3792 = vmatpush3.bf16.msra.mxu1 %v3791_v7 }
0x1fa4   :  { %v2830_v61 = vpop.permute.xlu1 %2829 }
0x1fa5   :  { %v2850_v35 = vsel %vm2848_vm11, %v2847_v56, %v2830_v61 }
0x1fa6   :  { %2852 = vst [vmem:[%s4797_s23 + $0x8] sm:$0xff] %v2850_v35 }
0x206f   :  { %v2938_v11 = vpop.f32.mrb[24].mxu1 }
0x2070   :  { %v2939_v2 = vadd.f32 %v3231_v8, %v2938_v11  ;;  %v3598_v62 = vpop.f32.mrb[25].mxu1 }
0x2072   :  { %3989 = vtanh.f32 %v2939_v2 }
0x207c   :  { %v3990_v0 = vpop.eup %3989 }
0x207d   :  { %3608 = vmatmul.mubr.msk.f32.vlgmr.msra.gmra.mrb[26].mxu1 %vm79_vm0, %v3990_v0 }
0x2150   :  { %v3023_v6 = vpop.f32.mrb[26].mxu1 }
0x2151   :  { %v3024_v9 = vadd.f32 %v3233_v33, %v3023_v6  ;;  %v3609_v13 = vpop.f32.mrb[27].mxu1 }
0x2153   :  { %3991 = vtanh.f32 %v3024_v9 }
0x215d   :  { %v3992_v14 = vpop.eup %3991 }
0x215e   :  { %3619 = vmatmul.mubr.msk.f32.vlgmr.msra.gmra.mrb[24].mxu0 %vm79_vm0, %v3992_v14 }
0x2231   :  { %v3108_v18 = vpop.f32.mrb[24].mxu0 }
0x2232   :  { %v3109_v41 = vadd.f32 %v3235_v40, %v3108_v18  ;;  %v3620_v17 = vpop.f32.mrb[25].mxu0 }
0x2234   :  { %3112 = vst [vmem:[%s4867_s7] sm:$0x3] %v3109_v41 }

</bundles_post_ra>
